<compile_context>
chip_gen: v7x
topology: tpu7x:2x2x1
jax: 0.10.0
libtpu: 0.0.40
codegen_flags: <defaults>
</compile_context>

<pallas_src>
import functools

import jax
import jax.numpy as jnp
from jax.experimental import pallas as pl
from jax.experimental.pallas import tpu as pltpu


# ----------------------------------------------------------------------------
# Fused multi-layer LSTM kernel (single invocation, everything VMEM-resident).
# ----------------------------------------------------------------------------
def _fused_lstm_kernel(x_ref, w_ih0_ref, w_ih_r_ref, w_hh_ref, b_ref,
                       h0_ref, c0_ref,
                       out_ref, h_n_ref, c_n_ref,
                       xp_ref,
                       *, hidden, num_layers, seq_len, batch):
    """All LSTM layers over the whole sequence.

    x_ref      : (T*B, 2H)          time-major flattened input (row = t*B + b)
    w_ih0_ref  : (2H, 4H)           layer-0 input weights
    w_ih_r_ref : (max(L-1,1),H,4H)  input weights of layers 1..L-1 (dummy if L==1)
    w_hh_ref   : (L, H, 4H)
    b_ref      : (L, 1, 4H)         folded bias (b_ih + b_hh)
    h0/c0_ref  : (L, B, H)
    out_ref    : (T*B, H)           per-step h of the LAST layer (also reused as
                                    the inter-layer buffer)
    h_n/c_n_ref: (L, B, H)
    xp_ref     : (T*B, 4H)          VMEM scratch: hoisted input projection
    """
    H, L, T, B = hidden, num_layers, seq_len, batch

    for layer in range(L):                       # static python loop, L small
        # ---- Phase 1: hoisted input projection (one MXU-friendly matmul) ----
        if layer == 0:
            xin = x_ref[...]                     # (T*B, 2H)
            w_ih = w_ih0_ref[...]                # (2H, 4H)
        else:
            xin = out_ref[...]                   # previous layer output (T*B, H)
            w_ih = w_ih_r_ref[layer - 1]         # (H, 4H)
        xp_ref[...] = (
            jnp.dot(xin, w_ih, preferred_element_type=jnp.float32)
            + b_ref[layer]                       # (1, 4H) broadcast, done once
        )

        w_hh = w_hh_ref[layer]                   # (H, 4H), loop-invariant
        h = h0_ref[layer]                        # (B, H)
        c = c0_ref[layer]                        # (B, H)

        # ---- Phase 2: sequential recurrence (only h @ W_hh left inside) -----
        # T is static & small -> full unroll; all slice offsets are static.
        for t in range(T):
            row = t * B
            gates = xp_ref[pl.ds(row, B), :] + jnp.dot(
                h, w_hh, preferred_element_type=jnp.float32)        # (B, 4H)
            i_g = jax.nn.sigmoid(gates[:, 0 * H:1 * H])
            f_g = jax.nn.sigmoid(gates[:, 1 * H:2 * H])
            g_g = jnp.tanh(gates[:, 2 * H:3 * H])
            o_g = jax.nn.sigmoid(gates[:, 3 * H:4 * H])
            c = f_g * c + i_g * g_g
            h = o_g * jnp.tanh(c)
            out_ref[pl.ds(row, B), :] = h

        h_n_ref[layer] = h
        c_n_ref[layer] = c


def fused_decoder_lstm(x2d, w_ih0, w_ih_rest, w_hh, bias, h0, c0):
    """x2d: (T*B, 2H) f32 time-major flattened. Returns (out2d, h_n, c_n)."""
    TB = x2d.shape[0]
    L, H, _ = w_hh.shape
    B = h0.shape[1]
    T = TB // B

    kernel = functools.partial(_fused_lstm_kernel, hidden=H, num_layers=L,
                               seq_len=T, batch=B)
    vmem = pl.BlockSpec(memory_space=pltpu.MemorySpace.VMEM)
    return pl.pallas_call(
        kernel,
        out_shape=(
            jax.ShapeDtypeStruct((TB, H), jnp.float32),    # out (last layer)
            jax.ShapeDtypeStruct((L, B, H), jnp.float32),  # h_n
            jax.ShapeDtypeStruct((L, B, H), jnp.float32),  # c_n
        ),
        in_specs=[vmem] * 7,
        out_specs=(vmem, vmem, vmem),
        scratch_shapes=[pltpu.VMEM((TB, 4 * H), jnp.float32)],
    )(x2d, w_ih0, w_ih_rest, w_hh, bias, h0, c0)


# ----------------------------------------------------------------------------
# Parameter init (deterministic, mirrors nn.Embedding + nn.LSTM shapes).
# ----------------------------------------------------------------------------
def init_params(key, num_labels, hidden_size, layer_nums):
    H = hidden_size
    keys = jax.random.split(key, 1 + 4 * layer_nums)
    embed = jax.random.normal(keys[0], (num_labels, H), jnp.float32)

    bound = 1.0 / jnp.sqrt(H)
    w_ih0 = None
    w_ih_rest, w_hh_all, bias_all = [], [], []
    for l in range(layer_nums):
        d_in = 2 * H if l == 0 else H
        k_wi, k_wh, k_bi, k_bh = keys[1 + 4 * l: 5 + 4 * l]
        # stored transposed relative to PyTorch: (in, 4H) / (H, 4H)
        w_ih = jax.random.uniform(k_wi, (d_in, 4 * H), jnp.float32, -bound, bound)
        w_hh = jax.random.uniform(k_wh, (H, 4 * H), jnp.float32, -bound, bound)
        b_ih = jax.random.uniform(k_bi, (4 * H,), jnp.float32, -bound, bound)
        b_hh = jax.random.uniform(k_bh, (4 * H,), jnp.float32, -bound, bound)
        if l == 0:
            w_ih0 = w_ih
        else:
            w_ih_rest.append(w_ih)
        w_hh_all.append(w_hh)
        bias_all.append((b_ih + b_hh).reshape(1, 4 * H))

    if w_ih_rest:
        w_ih_rest = jnp.stack(w_ih_rest)                      # (L-1, H, 4H)
    else:
        w_ih_rest = jnp.zeros((1, H, 4 * H), jnp.float32)     # unused dummy
    return {
        "embed": embed,
        "w_ih0": w_ih0,                                       # (2H, 4H)
        "w_ih_rest": w_ih_rest,
        "w_hh": jnp.stack(w_hh_all),                          # (L, H, 4H)
        "bias": jnp.stack(bias_all),                          # (L, 1, 4H)
    }


# ----------------------------------------------------------------------------
# Module forward (embedding gather + layout glue in JAX, LSTM in one kernel).
# ----------------------------------------------------------------------------
def decoder_forward(params, input_ids, hidden_states=None, input_feeds=None):
    # Embedding lookup + concat: tiny XLA gather kept outside the kernel.
    # TODO(synk): could fold the gather into the kernel via scalar-prefetched ids.
    emb = jnp.take(params["embed"], input_ids, axis=0)        # (B, T, H)
    x = emb if input_feeds is None else jnp.concatenate(
        [input_feeds, emb], axis=2)                           # (B, T, 2H)

    B, T, D = x.shape
    L, H, _ = params["w_hh"].shape
    if hidden_states is None:
        h0 = jnp.zeros((L, B, H), jnp.float32)
        c0 = jnp.zeros((L, B, H), jnp.float32)
    else:
        h0, c0 = hidden_states

    # time-major, flatten (T, B) -> rows so the kernel is purely 2-D (no
    # in-kernel reshapes).
    x2d = jnp.transpose(x, (1, 0, 2)).reshape(T * B, D).astype(jnp.float32)
    out2d, h_n, c_n = fused_decoder_lstm(
        x2d, params["w_ih0"], params["w_ih_rest"], params["w_hh"],
        params["bias"], h0.astype(jnp.float32), c0.astype(jnp.float32))
    out = jnp.transpose(out2d.reshape(T, B, H), (1, 0, 2))    # (B, T, H)
    return out, (h_n, c_n)


# ----------------------------------------------------------------------------
# Pure-JAX reference (for a correctness spot-check).
# ----------------------------------------------------------------------------
def _ref_lstm_layer(x_tbd, w_ih, w_hh, bias, h0, c0):
    H = h0.shape[-1]

    def step(carry, x_t):
        h, c = carry
        gates = x_t @ w_ih + h @ w_hh + bias
        i = jax.nn.sigmoid(gates[:, 0 * H:1 * H])
        f = jax.nn.sigmoid(gates[:, 1 * H:2 * H])
        g = jnp.tanh(gates[:, 2 * H:3 * H])
        o = jax.nn.sigmoid(gates[:, 3 * H:4 * H])
        c = f * c + i * g
        h = o * jnp.tanh(c)
        return (h, c), h

    (h_n, c_n), out = jax.lax.scan(step, (h0, c0), x_tbd)
    return out, h_n, c_n


def _ref_forward(params, input_ids, hidden_states, input_feeds):
    emb = jnp.take(params["embed"], input_ids, axis=0)
    x = jnp.concatenate([input_feeds, emb], axis=2)
    x = jnp.transpose(x, (1, 0, 2)).astype(jnp.float32)
    h0, c0 = hidden_states
    L = params["w_hh"].shape[0]
    hs, cs = [], []
    for l in range(L):
        w_ih = params["w_ih0"] if l == 0 else params["w_ih_rest"][l - 1]
        x, h_n, c_n = _ref_lstm_layer(x, w_ih, params["w_hh"][l],
                                      params["bias"][l], h0[l], c0[l])
        hs.append(h_n)
        cs.append(c_n)
    return jnp.transpose(x, (1, 0, 2)), (jnp.stack(hs), jnp.stack(cs))


if __name__ == "__main__":
    # config: num_labels=16, hidden_size=32, layer_nums=2
    NUM_LABELS, HIDDEN, LAYERS = 16, 32, 2
    B, T = 2, 8

    key = jax.random.PRNGKey(0)
    k_param, k_ids, k_feed, k_h, k_c = jax.random.split(key, 5)

    params = init_params(k_param, NUM_LABELS, HIDDEN, LAYERS)
    input_ids = jax.random.randint(k_ids, (B, T), 0, NUM_LABELS)
    input_feeds = jax.random.normal(k_feed, (B, T, HIDDEN), jnp.float32)
    h0 = jax.random.normal(k_h, (LAYERS, B, HIDDEN), jnp.float32) * 0.1
    c0 = jax.random.normal(k_c, (LAYERS, B, HIDDEN), jnp.float32) * 0.1

    out, (h_n, c_n) = decoder_forward(params, input_ids,
                                      hidden_states=(h0, c0),
                                      input_feeds=input_feeds)
    jax.block_until_ready((out, h_n, c_n))

    # Spot-check against a pure-JAX reference.
    ref_out, (ref_h, ref_c) = _ref_forward(params, input_ids, (h0, c0),
                                           input_feeds)
    assert jnp.allclose(out, ref_out, atol=3e-5), "output mismatch"
    assert jnp.allclose(h_n, ref_h, atol=3e-5), "h_n mismatch"
    assert jnp.allclose(c_n, ref_c, atol=3e-5), "c_n mismatch"

    print("KERNEL_OK")
</pallas_src>

<mosaic_0001>
module attributes {stable_mosaic.version = 11 : i64} {
  func.func @_fused_lstm_kernel(%arg0: memref<16x64xf32, #tpu.memory_space<vmem>>, %arg1: memref<64x128xf32, #tpu.memory_space<vmem>>, %arg2: memref<1x32x128xf32, #tpu.memory_space<vmem>>, %arg3: memref<2x32x128xf32, #tpu.memory_space<vmem>>, %arg4: memref<2x1x128xf32, #tpu.memory_space<vmem>>, %arg5: memref<2x2x32xf32, #tpu.memory_space<vmem>>, %arg6: memref<2x2x32xf32, #tpu.memory_space<vmem>>, %arg7: memref<16x32xf32, #tpu.memory_space<vmem>>, %arg8: memref<2x2x32xf32, #tpu.memory_space<vmem>>, %arg9: memref<2x2x32xf32, #tpu.memory_space<vmem>>, %arg10: memref<16x128xf32, #tpu.memory_space<vmem>>) attributes {dimension_semantics = [], scalar_prefetch = 0 : i64, scratch_operands = 1 : i64, tpu.core_type = #tpu.core_type<tc>} {
    %c0 = arith.constant 0 : index
    %c0_0 = arith.constant 0 : index
    %0 = vector.load %arg0[%c0, %c0_0] : memref<16x64xf32, #tpu.memory_space<vmem>>, vector<16x64xf32>
    %c0_1 = arith.constant 0 : index
    %c0_2 = arith.constant 0 : index
    %1 = vector.load %arg1[%c0_1, %c0_2] : memref<64x128xf32, #tpu.memory_space<vmem>>, vector<64x128xf32>
    %cst = arith.constant dense<0.000000e+00> : vector<16x128xf32>
    %2 = tpu.matmul %0, %1, %cst {dimension_numbers = #tpu.dot_dimension_numbers<[1], [0], [0], [1], [0, 0, 1, 1], [], []>} : vector<16x64xf32>, vector<64x128xf32>, vector<16x128xf32> -> vector<16x128xf32>
    %c0_3 = arith.constant 0 : index
    %c0_4 = arith.constant 0 : index
    %c0_5 = arith.constant 0 : index
    %3 = vector.load %arg4[%c0_3, %c0_4, %c0_5] : memref<2x1x128xf32, #tpu.memory_space<vmem>>, vector<1x1x128xf32>
    %4 = vector.shape_cast %3 : vector<1x1x128xf32> to vector<1x128xf32>
    %5 = vector.broadcast %4 : vector<1x128xf32> to vector<16x128xf32>
    %6 = arith.addf %2, %5 : vector<16x128xf32>
    %c0_6 = arith.constant 0 : index
    %c0_7 = arith.constant 0 : index
    %7 = vector.load %arg10[%c0_6, %c0_7] : memref<16x128xf32, #tpu.memory_space<vmem>>, vector<16x128xf32>
    tpu.vector_store %arg10[%c0_6, %c0_7], %6 {strides = array<i32>} : memref<16x128xf32, #tpu.memory_space<vmem>>, vector<16x128xf32>,
    %c0_8 = arith.constant 0 : index
    %c0_9 = arith.constant 0 : index
    %c0_10 = arith.constant 0 : index
    %8 = vector.load %arg3[%c0_8, %c0_9, %c0_10] : memref<2x32x128xf32, #tpu.memory_space<vmem>>, vector<1x32x128xf32>
    %9 = vector.shape_cast %8 : vector<1x32x128xf32> to vector<32x128xf32>
    %c0_11 = arith.constant 0 : index
    %c0_12 = arith.constant 0 : index
    %c0_13 = arith.constant 0 : index
    %10 = vector.load %arg5[%c0_11, %c0_12, %c0_13] : memref<2x2x32xf32, #tpu.memory_space<vmem>>, vector<1x2x32xf32>
    %11 = vector.shape_cast %10 : vector<1x2x32xf32> to vector<2x32xf32>
    %c0_14 = arith.constant 0 : index
    %c0_15 = arith.constant 0 : index
    %c0_16 = arith.constant 0 : index
    %12 = vector.load %arg6[%c0_14, %c0_15, %c0_16] : memref<2x2x32xf32, #tpu.memory_space<vmem>>, vector<1x2x32xf32>
    %13 = vector.shape_cast %12 : vector<1x2x32xf32> to vector<2x32xf32>
    %c0_17 = arith.constant 0 : index
    %c0_18 = arith.constant 0 : index
    %14 = vector.load %arg10[%c0_17, %c0_18] : memref<16x128xf32, #tpu.memory_space<vmem>>, vector<2x128xf32>
    %cst_19 = arith.constant dense<0.000000e+00> : vector<2x128xf32>
    %15 = tpu.matmul %11, %9, %cst_19 {dimension_numbers = #tpu.dot_dimension_numbers<[1], [0], [0], [1], [0, 0, 1, 1], [], []>} : vector<2x32xf32>, vector<32x128xf32>, vector<2x128xf32> -> vector<2x128xf32>
    %16 = arith.addf %14, %15 : vector<2x128xf32>
    %17 = vector.extract_strided_slice %16 {offsets = [0, 0], sizes = [2, 32], strides = [1, 1]} : vector<2x128xf32> to vector<2x32xf32>
    %18 = arith.negf %17 : vector<2x32xf32>
    %19 = math.exp %18 : vector<2x32xf32>
    %cst_20 = arith.constant 1.000000e+00 : f32
    %20 = vector.broadcast %cst_20 : f32 to vector<2x32xf32>
    %21 = arith.addf %20, %19 : vector<2x32xf32>
    %22 = arith.divf %20, %21 : vector<2x32xf32>
    %23 = vector.extract_strided_slice %16 {offsets = [0, 32], sizes = [2, 32], strides = [1, 1]} : vector<2x128xf32> to vector<2x32xf32>
    %24 = arith.negf %23 : vector<2x32xf32>
    %25 = math.exp %24 : vector<2x32xf32>
    %cst_21 = arith.constant 1.000000e+00 : f32
    %26 = vector.broadcast %cst_21 : f32 to vector<2x32xf32>
    %27 = arith.addf %26, %25 : vector<2x32xf32>
    %28 = arith.divf %26, %27 : vector<2x32xf32>
    %29 = vector.extract_strided_slice %16 {offsets = [0, 64], sizes = [2, 32], strides = [1, 1]} : vector<2x128xf32> to vector<2x32xf32>
    %30 = math.tanh %29 : vector<2x32xf32>
    %31 = vector.extract_strided_slice %16 {offsets = [0, 96], sizes = [2, 32], strides = [1, 1]} : vector<2x128xf32> to vector<2x32xf32>
    %32 = arith.negf %31 : vector<2x32xf32>
    %33 = math.exp %32 : vector<2x32xf32>
    %cst_22 = arith.constant 1.000000e+00 : f32
    %34 = vector.broadcast %cst_22 : f32 to vector<2x32xf32>
    %35 = arith.addf %34, %33 : vector<2x32xf32>
    %36 = arith.divf %34, %35 : vector<2x32xf32>
    %37 = arith.mulf %28, %13 : vector<2x32xf32>
    %38 = arith.mulf %22, %30 : vector<2x32xf32>
    %39 = arith.addf %37, %38 : vector<2x32xf32>
    %40 = math.tanh %39 : vector<2x32xf32>
    %41 = arith.mulf %36, %40 : vector<2x32xf32>
    %c0_23 = arith.constant 0 : index
    %c0_24 = arith.constant 0 : index
    %42 = vector.load %arg7[%c0_23, %c0_24] : memref<16x32xf32, #tpu.memory_space<vmem>>, vector<2x32xf32>
    tpu.vector_store %arg7[%c0_23, %c0_24], %41 {strides = array<i32>} : memref<16x32xf32, #tpu.memory_space<vmem>>, vector<2x32xf32>,
    %c2 = arith.constant 2 : index
    %c0_25 = arith.constant 0 : index
    %43 = vector.load %arg10[%c2, %c0_25] : memref<16x128xf32, #tpu.memory_space<vmem>>, vector<2x128xf32>
    %cst_26 = arith.constant dense<0.000000e+00> : vector<2x128xf32>
    %44 = tpu.matmul %41, %9, %cst_26 {dimension_numbers = #tpu.dot_dimension_numbers<[1], [0], [0], [1], [0, 0, 1, 1], [], []>} : vector<2x32xf32>, vector<32x128xf32>, vector<2x128xf32> -> vector<2x128xf32>
    %45 = arith.addf %43, %44 : vector<2x128xf32>
    %46 = vector.extract_strided_slice %45 {offsets = [0, 0], sizes = [2, 32], strides = [1, 1]} : vector<2x128xf32> to vector<2x32xf32>
    %47 = arith.negf %46 : vector<2x32xf32>
    %48 = math.exp %47 : vector<2x32xf32>
    %cst_27 = arith.constant 1.000000e+00 : f32
    %49 = vector.broadcast %cst_27 : f32 to vector<2x32xf32>
    %50 = arith.addf %49, %48 : vector<2x32xf32>
    %51 = arith.divf %49, %50 : vector<2x32xf32>
    %52 = vector.extract_strided_slice %45 {offsets = [0, 32], sizes = [2, 32], strides = [1, 1]} : vector<2x128xf32> to vector<2x32xf32>
    %53 = arith.negf %52 : vector<2x32xf32>
    %54 = math.exp %53 : vector<2x32xf32>
    %cst_28 = arith.constant 1.000000e+00 : f32
    %55 = vector.broadcast %cst_28 : f32 to vector<2x32xf32>
    %56 = arith.addf %55, %54 : vector<2x32xf32>
    %57 = arith.divf %55, %56 : vector<2x32xf32>
    %58 = vector.extract_strided_slice %45 {offsets = [0, 64], sizes = [2, 32], strides = [1, 1]} : vector<2x128xf32> to vector<2x32xf32>
    %59 = math.tanh %58 : vector<2x32xf32>
    %60 = vector.extract_strided_slice %45 {offsets = [0, 96], sizes = [2, 32], strides = [1, 1]} : vector<2x128xf32> to vector<2x32xf32>
    %61 = arith.negf %60 : vector<2x32xf32>
    %62 = math.exp %61 : vector<2x32xf32>
    %cst_29 = arith.constant 1.000000e+00 : f32
    %63 = vector.broadcast %cst_29 : f32 to vector<2x32xf32>
    %64 = arith.addf %63, %62 : vector<2x32xf32>
    %65 = arith.divf %63, %64 : vector<2x32xf32>
    %66 = arith.mulf %57, %39 : vector<2x32xf32>
    %67 = arith.mulf %51, %59 : vector<2x32xf32>
    %68 = arith.addf %66, %67 : vector<2x32xf32>
    %69 = math.tanh %68 : vector<2x32xf32>
    %70 = arith.mulf %65, %69 : vector<2x32xf32>
    %c2_30 = arith.constant 2 : index
    %c0_31 = arith.constant 0 : index
    %71 = vector.load %arg7[%c2_30, %c0_31] : memref<16x32xf32, #tpu.memory_space<vmem>>, vector<2x32xf32>
    tpu.vector_store %arg7[%c2_30, %c0_31], %70 {strides = array<i32>} : memref<16x32xf32, #tpu.memory_space<vmem>>, vector<2x32xf32>,
    %c4 = arith.constant 4 : index
    %c0_32 = arith.constant 0 : index
    %72 = vector.load %arg10[%c4, %c0_32] : memref<16x128xf32, #tpu.memory_space<vmem>>, vector<2x128xf32>
    %cst_33 = arith.constant dense<0.000000e+00> : vector<2x128xf32>
    %73 = tpu.matmul %70, %9, %cst_33 {dimension_numbers = #tpu.dot_dimension_numbers<[1], [0], [0], [1], [0, 0, 1, 1], [], []>} : vector<2x32xf32>, vector<32x128xf32>, vector<2x128xf32> -> vector<2x128xf32>
    %74 = arith.addf %72, %73 : vector<2x128xf32>
    %75 = vector.extract_strided_slice %74 {offsets = [0, 0], sizes = [2, 32], strides = [1, 1]} : vector<2x128xf32> to vector<2x32xf32>
    %76 = arith.negf %75 : vector<2x32xf32>
    %77 = math.exp %76 : vector<2x32xf32>
    %cst_34 = arith.constant 1.000000e+00 : f32
    %78 = vector.broadcast %cst_34 : f32 to vector<2x32xf32>
    %79 = arith.addf %78, %77 : vector<2x32xf32>
    %80 = arith.divf %78, %79 : vector<2x32xf32>
    %81 = vector.extract_strided_slice %74 {offsets = [0, 32], sizes = [2, 32], strides = [1, 1]} : vector<2x128xf32> to vector<2x32xf32>
    %82 = arith.negf %81 : vector<2x32xf32>
    %83 = math.exp %82 : vector<2x32xf32>
    %cst_35 = arith.constant 1.000000e+00 : f32
    %84 = vector.broadcast %cst_35 : f32 to vector<2x32xf32>
    %85 = arith.addf %84, %83 : vector<2x32xf32>
    %86 = arith.divf %84, %85 : vector<2x32xf32>
    %87 = vector.extract_strided_slice %74 {offsets = [0, 64], sizes = [2, 32], strides = [1, 1]} : vector<2x128xf32> to vector<2x32xf32>
    %88 = math.tanh %87 : vector<2x32xf32>
    %89 = vector.extract_strided_slice %74 {offsets = [0, 96], sizes = [2, 32], strides = [1, 1]} : vector<2x128xf32> to vector<2x32xf32>
    %90 = arith.negf %89 : vector<2x32xf32>
    %91 = math.exp %90 : vector<2x32xf32>
    %cst_36 = arith.constant 1.000000e+00 : f32
    %92 = vector.broadcast %cst_36 : f32 to vector<2x32xf32>
    %93 = arith.addf %92, %91 : vector<2x32xf32>
    %94 = arith.divf %92, %93 : vector<2x32xf32>
    %95 = arith.mulf %86, %68 : vector<2x32xf32>
    %96 = arith.mulf %80, %88 : vector<2x32xf32>
    %97 = arith.addf %95, %96 : vector<2x32xf32>
    %98 = math.tanh %97 : vector<2x32xf32>
    %99 = arith.mulf %94, %98 : vector<2x32xf32>
    %c4_37 = arith.constant 4 : index
    %c0_38 = arith.constant 0 : index
    %100 = vector.load %arg7[%c4_37, %c0_38] : memref<16x32xf32, #tpu.memory_space<vmem>>, vector<2x32xf32>
    tpu.vector_store %arg7[%c4_37, %c0_38], %99 {strides = array<i32>} : memref<16x32xf32, #tpu.memory_space<vmem>>, vector<2x32xf32>,
    %c6 = arith.constant 6 : index
    %c0_39 = arith.constant 0 : index
    %101 = vector.load %arg10[%c6, %c0_39] : memref<16x128xf32, #tpu.memory_space<vmem>>, vector<2x128xf32>
    %cst_40 = arith.constant dense<0.000000e+00> : vector<2x128xf32>
    %102 = tpu.matmul %99, %9, %cst_40 {dimension_numbers = #tpu.dot_dimension_numbers<[1], [0], [0], [1], [0, 0, 1, 1], [], []>} : vector<2x32xf32>, vector<32x128xf32>, vector<2x128xf32> -> vector<2x128xf32>
    %103 = arith.addf %101, %102 : vector<2x128xf32>
    %104 = vector.extract_strided_slice %103 {offsets = [0, 0], sizes = [2, 32], strides = [1, 1]} : vector<2x128xf32> to vector<2x32xf32>
    %105 = arith.negf %104 : vector<2x32xf32>
    %106 = math.exp %105 : vector<2x32xf32>
    %cst_41 = arith.constant 1.000000e+00 : f32
    %107 = vector.broadcast %cst_41 : f32 to vector<2x32xf32>
    %108 = arith.addf %107, %106 : vector<2x32xf32>
    %109 = arith.divf %107, %108 : vector<2x32xf32>
    %110 = vector.extract_strided_slice %103 {offsets = [0, 32], sizes = [2, 32], strides = [1, 1]} : vector<2x128xf32> to vector<2x32xf32>
    %111 = arith.negf %110 : vector<2x32xf32>
    %112 = math.exp %111 : vector<2x32xf32>
    %cst_42 = arith.constant 1.000000e+00 : f32
    %113 = vector.broadcast %cst_42 : f32 to vector<2x32xf32>
    %114 = arith.addf %113, %112 : vector<2x32xf32>
    %115 = arith.divf %113, %114 : vector<2x32xf32>
    %116 = vector.extract_strided_slice %103 {offsets = [0, 64], sizes = [2, 32], strides = [1, 1]} : vector<2x128xf32> to vector<2x32xf32>
    %117 = math.tanh %116 : vector<2x32xf32>
    %118 = vector.extract_strided_slice %103 {offsets = [0, 96], sizes = [2, 32], strides = [1, 1]} : vector<2x128xf32> to vector<2x32xf32>
    %119 = arith.negf %118 : vector<2x32xf32>
    %120 = math.exp %119 : vector<2x32xf32>
    %cst_43 = arith.constant 1.000000e+00 : f32
    %121 = vector.broadcast %cst_43 : f32 to vector<2x32xf32>
    %122 = arith.addf %121, %120 : vector<2x32xf32>
    %123 = arith.divf %121, %122 : vector<2x32xf32>
    %124 = arith.mulf %115, %97 : vector<2x32xf32>
    %125 = arith.mulf %109, %117 : vector<2x32xf32>
    %126 = arith.addf %124, %125 : vector<2x32xf32>
    %127 = math.tanh %126 : vector<2x32xf32>
    %128 = arith.mulf %123, %127 : vector<2x32xf32>
    %c6_44 = arith.constant 6 : index
    %c0_45 = arith.constant 0 : index
    %129 = vector.load %arg7[%c6_44, %c0_45] : memref<16x32xf32, #tpu.memory_space<vmem>>, vector<2x32xf32>
    tpu.vector_store %arg7[%c6_44, %c0_45], %128 {strides = array<i32>} : memref<16x32xf32, #tpu.memory_space<vmem>>, vector<2x32xf32>,
    %c8 = arith.constant 8 : index
    %c0_46 = arith.constant 0 : index
    %130 = vector.load %arg10[%c8, %c0_46] : memref<16x128xf32, #tpu.memory_space<vmem>>, vector<2x128xf32>
    %cst_47 = arith.constant dense<0.000000e+00> : vector<2x128xf32>
    %131 = tpu.matmul %128, %9, %cst_47 {dimension_numbers = #tpu.dot_dimension_numbers<[1], [0], [0], [1], [0, 0, 1, 1], [], []>} : vector<2x32xf32>, vector<32x128xf32>, vector<2x128xf32> -> vector<2x128xf32>
    %132 = arith.addf %130, %131 : vector<2x128xf32>
    %133 = vector.extract_strided_slice %132 {offsets = [0, 0], sizes = [2, 32], strides = [1, 1]} : vector<2x128xf32> to vector<2x32xf32>
    %134 = arith.negf %133 : vector<2x32xf32>
    %135 = math.exp %134 : vector<2x32xf32>
    %cst_48 = arith.constant 1.000000e+00 : f32
    %136 = vector.broadcast %cst_48 : f32 to vector<2x32xf32>
    %137 = arith.addf %136, %135 : vector<2x32xf32>
    %138 = arith.divf %136, %137 : vector<2x32xf32>
    %139 = vector.extract_strided_slice %132 {offsets = [0, 32], sizes = [2, 32], strides = [1, 1]} : vector<2x128xf32> to vector<2x32xf32>
    %140 = arith.negf %139 : vector<2x32xf32>
    %141 = math.exp %140 : vector<2x32xf32>
    %cst_49 = arith.constant 1.000000e+00 : f32
    %142 = vector.broadcast %cst_49 : f32 to vector<2x32xf32>
    %143 = arith.addf %142, %141 : vector<2x32xf32>
    %144 = arith.divf %142, %143 : vector<2x32xf32>
    %145 = vector.extract_strided_slice %132 {offsets = [0, 64], sizes = [2, 32], strides = [1, 1]} : vector<2x128xf32> to vector<2x32xf32>
    %146 = math.tanh %145 : vector<2x32xf32>
    %147 = vector.extract_strided_slice %132 {offsets = [0, 96], sizes = [2, 32], strides = [1, 1]} : vector<2x128xf32> to vector<2x32xf32>
    %148 = arith.negf %147 : vector<2x32xf32>
    %149 = math.exp %148 : vector<2x32xf32>
    %cst_50 = arith.constant 1.000000e+00 : f32
    %150 = vector.broadcast %cst_50 : f32 to vector<2x32xf32>
    %151 = arith.addf %150, %149 : vector<2x32xf32>
    %152 = arith.divf %150, %151 : vector<2x32xf32>
    %153 = arith.mulf %144, %126 : vector<2x32xf32>
    %154 = arith.mulf %138, %146 : vector<2x32xf32>
    %155 = arith.addf %153, %154 : vector<2x32xf32>
    %156 = math.tanh %155 : vector<2x32xf32>
    %157 = arith.mulf %152, %156 : vector<2x32xf32>
    %c8_51 = arith.constant 8 : index
    %c0_52 = arith.constant 0 : index
    %158 = vector.load %arg7[%c8_51, %c0_52] : memref<16x32xf32, #tpu.memory_space<vmem>>, vector<2x32xf32>
    tpu.vector_store %arg7[%c8_51, %c0_52], %157 {strides = array<i32>} : memref<16x32xf32, #tpu.memory_space<vmem>>, vector<2x32xf32>,
    %c10 = arith.constant 10 : index
    %c0_53 = arith.constant 0 : index
    %159 = vector.load %arg10[%c10, %c0_53] : memref<16x128xf32, #tpu.memory_space<vmem>>, vector<2x128xf32>
    %cst_54 = arith.constant dense<0.000000e+00> : vector<2x128xf32>
    %160 = tpu.matmul %157, %9, %cst_54 {dimension_numbers = #tpu.dot_dimension_numbers<[1], [0], [0], [1], [0, 0, 1, 1], [], []>} : vector<2x32xf32>, vector<32x128xf32>, vector<2x128xf32> -> vector<2x128xf32>
    %161 = arith.addf %159, %160 : vector<2x128xf32>
    %162 = vector.extract_strided_slice %161 {offsets = [0, 0], sizes = [2, 32], strides = [1, 1]} : vector<2x128xf32> to vector<2x32xf32>
    %163 = arith.negf %162 : vector<2x32xf32>
    %164 = math.exp %163 : vector<2x32xf32>
    %cst_55 = arith.constant 1.000000e+00 : f32
    %165 = vector.broadcast %cst_55 : f32 to vector<2x32xf32>
    %166 = arith.addf %165, %164 : vector<2x32xf32>
    %167 = arith.divf %165, %166 : vector<2x32xf32>
    %168 = vector.extract_strided_slice %161 {offsets = [0, 32], sizes = [2, 32], strides = [1, 1]} : vector<2x128xf32> to vector<2x32xf32>
    %169 = arith.negf %168 : vector<2x32xf32>
    %170 = math.exp %169 : vector<2x32xf32>
    %cst_56 = arith.constant 1.000000e+00 : f32
    %171 = vector.broadcast %cst_56 : f32 to vector<2x32xf32>
    %172 = arith.addf %171, %170 : vector<2x32xf32>
    %173 = arith.divf %171, %172 : vector<2x32xf32>
    %174 = vector.extract_strided_slice %161 {offsets = [0, 64], sizes = [2, 32], strides = [1, 1]} : vector<2x128xf32> to vector<2x32xf32>
    %175 = math.tanh %174 : vector<2x32xf32>
    %176 = vector.extract_strided_slice %161 {offsets = [0, 96], sizes = [2, 32], strides = [1, 1]} : vector<2x128xf32> to vector<2x32xf32>
    %177 = arith.negf %176 : vector<2x32xf32>
    %178 = math.exp %177 : vector<2x32xf32>
    %cst_57 = arith.constant 1.000000e+00 : f32
    %179 = vector.broadcast %cst_57 : f32 to vector<2x32xf32>
    %180 = arith.addf %179, %178 : vector<2x32xf32>
    %181 = arith.divf %179, %180 : vector<2x32xf32>
    %182 = arith.mulf %173, %155 : vector<2x32xf32>
    %183 = arith.mulf %167, %175 : vector<2x32xf32>
    %184 = arith.addf %182, %183 : vector<2x32xf32>
    %185 = math.tanh %184 : vector<2x32xf32>
    %186 = arith.mulf %181, %185 : vector<2x32xf32>
    %c10_58 = arith.constant 10 : index
    %c0_59 = arith.constant 0 : index
    %187 = vector.load %arg7[%c10_58, %c0_59] : memref<16x32xf32, #tpu.memory_space<vmem>>, vector<2x32xf32>
    tpu.vector_store %arg7[%c10_58, %c0_59], %186 {strides = array<i32>} : memref<16x32xf32, #tpu.memory_space<vmem>>, vector<2x32xf32>,
    %c12 = arith.constant 12 : index
    %c0_60 = arith.constant 0 : index
    %188 = vector.load %arg10[%c12, %c0_60] : memref<16x128xf32, #tpu.memory_space<vmem>>, vector<2x128xf32>
    %cst_61 = arith.constant dense<0.000000e+00> : vector<2x128xf32>
    %189 = tpu.matmul %186, %9, %cst_61 {dimension_numbers = #tpu.dot_dimension_numbers<[1], [0], [0], [1], [0, 0, 1, 1], [], []>} : vector<2x32xf32>, vector<32x128xf32>, vector<2x128xf32> -> vector<2x128xf32>
    %190 = arith.addf %188, %189 : vector<2x128xf32>
    %191 = vector.extract_strided_slice %190 {offsets = [0, 0], sizes = [2, 32], strides = [1, 1]} : vector<2x128xf32> to vector<2x32xf32>
    %192 = arith.negf %191 : vector<2x32xf32>
    %193 = math.exp %192 : vector<2x32xf32>
    %cst_62 = arith.constant 1.000000e+00 : f32
    %194 = vector.broadcast %cst_62 : f32 to vector<2x32xf32>
    %195 = arith.addf %194, %193 : vector<2x32xf32>
    %196 = arith.divf %194, %195 : vector<2x32xf32>
    %197 = vector.extract_strided_slice %190 {offsets = [0, 32], sizes = [2, 32], strides = [1, 1]} : vector<2x128xf32> to vector<2x32xf32>
    %198 = arith.negf %197 : vector<2x32xf32>
    %199 = math.exp %198 : vector<2x32xf32>
    %cst_63 = arith.constant 1.000000e+00 : f32
    %200 = vector.broadcast %cst_63 : f32 to vector<2x32xf32>
    %201 = arith.addf %200, %199 : vector<2x32xf32>
    %202 = arith.divf %200, %201 : vector<2x32xf32>
    %203 = vector.extract_strided_slice %190 {offsets = [0, 64], sizes = [2, 32], strides = [1, 1]} : vector<2x128xf32> to vector<2x32xf32>
    %204 = math.tanh %203 : vector<2x32xf32>
    %205 = vector.extract_strided_slice %190 {offsets = [0, 96], sizes = [2, 32], strides = [1, 1]} : vector<2x128xf32> to vector<2x32xf32>
    %206 = arith.negf %205 : vector<2x32xf32>
    %207 = math.exp %206 : vector<2x32xf32>
    %cst_64 = arith.constant 1.000000e+00 : f32
    %208 = vector.broadcast %cst_64 : f32 to vector<2x32xf32>
    %209 = arith.addf %208, %207 : vector<2x32xf32>
    %210 = arith.divf %208, %209 : vector<2x32xf32>
    %211 = arith.mulf %202, %184 : vector<2x32xf32>
    %212 = arith.mulf %196, %204 : vector<2x32xf32>
    %213 = arith.addf %211, %212 : vector<2x32xf32>
    %214 = math.tanh %213 : vector<2x32xf32>
    %215 = arith.mulf %210, %214 : vector<2x32xf32>
    %c12_65 = arith.constant 12 : index
    %c0_66 = arith.constant 0 : index
    %216 = vector.load %arg7[%c12_65, %c0_66] : memref<16x32xf32, #tpu.memory_space<vmem>>, vector<2x32xf32>
    tpu.vector_store %arg7[%c12_65, %c0_66], %215 {strides = array<i32>} : memref<16x32xf32, #tpu.memory_space<vmem>>, vector<2x32xf32>,
    %c14 = arith.constant 14 : index
    %c0_67 = arith.constant 0 : index
    %217 = vector.load %arg10[%c14, %c0_67] : memref<16x128xf32, #tpu.memory_space<vmem>>, vector<2x128xf32>
    %cst_68 = arith.constant dense<0.000000e+00> : vector<2x128xf32>
    %218 = tpu.matmul %215, %9, %cst_68 {dimension_numbers = #tpu.dot_dimension_numbers<[1], [0], [0], [1], [0, 0, 1, 1], [], []>} : vector<2x32xf32>, vector<32x128xf32>, vector<2x128xf32> -> vector<2x128xf32>
    %219 = arith.addf %217, %218 : vector<2x128xf32>
    %220 = vector.extract_strided_slice %219 {offsets = [0, 0], sizes = [2, 32], strides = [1, 1]} : vector<2x128xf32> to vector<2x32xf32>
    %221 = arith.negf %220 : vector<2x32xf32>
    %222 = math.exp %221 : vector<2x32xf32>
    %cst_69 = arith.constant 1.000000e+00 : f32
    %223 = vector.broadcast %cst_69 : f32 to vector<2x32xf32>
    %224 = arith.addf %223, %222 : vector<2x32xf32>
    %225 = arith.divf %223, %224 : vector<2x32xf32>
    %226 = vector.extract_strided_slice %219 {offsets = [0, 32], sizes = [2, 32], strides = [1, 1]} : vector<2x128xf32> to vector<2x32xf32>
    %227 = arith.negf %226 : vector<2x32xf32>
    %228 = math.exp %227 : vector<2x32xf32>
    %cst_70 = arith.constant 1.000000e+00 : f32
    %229 = vector.broadcast %cst_70 : f32 to vector<2x32xf32>
    %230 = arith.addf %229, %228 : vector<2x32xf32>
    %231 = arith.divf %229, %230 : vector<2x32xf32>
    %232 = vector.extract_strided_slice %219 {offsets = [0, 64], sizes = [2, 32], strides = [1, 1]} : vector<2x128xf32> to vector<2x32xf32>
    %233 = math.tanh %232 : vector<2x32xf32>
    %234 = vector.extract_strided_slice %219 {offsets = [0, 96], sizes = [2, 32], strides = [1, 1]} : vector<2x128xf32> to vector<2x32xf32>
    %235 = arith.negf %234 : vector<2x32xf32>
    %236 = math.exp %235 : vector<2x32xf32>
    %cst_71 = arith.constant 1.000000e+00 : f32
    %237 = vector.broadcast %cst_71 : f32 to vector<2x32xf32>
    %238 = arith.addf %237, %236 : vector<2x32xf32>
    %239 = arith.divf %237, %238 : vector<2x32xf32>
    %240 = arith.mulf %231, %213 : vector<2x32xf32>
    %241 = arith.mulf %225, %233 : vector<2x32xf32>
    %242 = arith.addf %240, %241 : vector<2x32xf32>
    %243 = math.tanh %242 : vector<2x32xf32>
    %244 = arith.mulf %239, %243 : vector<2x32xf32>
    %c14_72 = arith.constant 14 : index
    %c0_73 = arith.constant 0 : index
    %245 = vector.load %arg7[%c14_72, %c0_73] : memref<16x32xf32, #tpu.memory_space<vmem>>, vector<2x32xf32>
    tpu.vector_store %arg7[%c14_72, %c0_73], %244 {strides = array<i32>} : memref<16x32xf32, #tpu.memory_space<vmem>>, vector<2x32xf32>,
    %c0_74 = arith.constant 0 : index
    %c0_75 = arith.constant 0 : index
    %c0_76 = arith.constant 0 : index
    %246 = vector.load %arg8[%c0_74, %c0_75, %c0_76] : memref<2x2x32xf32, #tpu.memory_space<vmem>>, vector<1x2x32xf32>
    %247 = vector.shape_cast %246 : vector<1x2x32xf32> to vector<2x32xf32>
    %248 = vector.shape_cast %244 : vector<2x32xf32> to vector<1x2x32xf32>
    tpu.vector_store %arg8[%c0_74, %c0_75, %c0_76], %248 {strides = array<i32>} : memref<2x2x32xf32, #tpu.memory_space<vmem>>, vector<1x2x32xf32>,
    %c0_77 = arith.constant 0 : index
    %c0_78 = arith.constant 0 : index
    %c0_79 = arith.constant 0 : index
    %249 = vector.load %arg9[%c0_77, %c0_78, %c0_79] : memref<2x2x32xf32, #tpu.memory_space<vmem>>, vector<1x2x32xf32>
    %250 = vector.shape_cast %249 : vector<1x2x32xf32> to vector<2x32xf32>
    %251 = vector.shape_cast %242 : vector<2x32xf32> to vector<1x2x32xf32>
    tpu.vector_store %arg9[%c0_77, %c0_78, %c0_79], %251 {strides = array<i32>} : memref<2x2x32xf32, #tpu.memory_space<vmem>>, vector<1x2x32xf32>,
    %c0_80 = arith.constant 0 : index
    %c0_81 = arith.constant 0 : index
    %252 = vector.load %arg7[%c0_80, %c0_81] : memref<16x32xf32, #tpu.memory_space<vmem>>, vector<16x32xf32>
    %c0_82 = arith.constant 0 : index
    %c0_83 = arith.constant 0 : index
    %c0_84 = arith.constant 0 : index
    %253 = vector.load %arg2[%c0_82, %c0_83, %c0_84] : memref<1x32x128xf32, #tpu.memory_space<vmem>>, vector<1x32x128xf32>
    %254 = vector.shape_cast %253 : vector<1x32x128xf32> to vector<32x128xf32>
    %cst_85 = arith.constant dense<0.000000e+00> : vector<16x128xf32>
    %255 = tpu.matmul %252, %254, %cst_85 {dimension_numbers = #tpu.dot_dimension_numbers<[1], [0], [0], [1], [0, 0, 1, 1], [], []>} : vector<16x32xf32>, vector<32x128xf32>, vector<16x128xf32> -> vector<16x128xf32>
    %c1 = arith.constant 1 : index
    %c0_86 = arith.constant 0 : index
    %c0_87 = arith.constant 0 : index
    %256 = vector.load %arg4[%c1, %c0_86, %c0_87] : memref<2x1x128xf32, #tpu.memory_space<vmem>>, vector<1x1x128xf32>
    %257 = vector.shape_cast %256 : vector<1x1x128xf32> to vector<1x128xf32>
    %258 = vector.broadcast %257 : vector<1x128xf32> to vector<16x128xf32>
    %259 = arith.addf %255, %258 : vector<16x128xf32>
    %c0_88 = arith.constant 0 : index
    %c0_89 = arith.constant 0 : index
    %260 = vector.load %arg10[%c0_88, %c0_89] : memref<16x128xf32, #tpu.memory_space<vmem>>, vector<16x128xf32>
    tpu.vector_store %arg10[%c0_88, %c0_89], %259 {strides = array<i32>} : memref<16x128xf32, #tpu.memory_space<vmem>>, vector<16x128xf32>,
    %c1_90 = arith.constant 1 : index
    %c0_91 = arith.constant 0 : index
    %c0_92 = arith.constant 0 : index
    %261 = vector.load %arg3[%c1_90, %c0_91, %c0_92] : memref<2x32x128xf32, #tpu.memory_space<vmem>>, vector<1x32x128xf32>
    %262 = vector.shape_cast %261 : vector<1x32x128xf32> to vector<32x128xf32>
    %c1_93 = arith.constant 1 : index
    %c0_94 = arith.constant 0 : index
    %c0_95 = arith.constant 0 : index
    %263 = vector.load %arg5[%c1_93, %c0_94, %c0_95] : memref<2x2x32xf32, #tpu.memory_space<vmem>>, vector<1x2x32xf32>
    %264 = vector.shape_cast %263 : vector<1x2x32xf32> to vector<2x32xf32>
    %c1_96 = arith.constant 1 : index
    %c0_97 = arith.constant 0 : index
    %c0_98 = arith.constant 0 : index
    %265 = vector.load %arg6[%c1_96, %c0_97, %c0_98] : memref<2x2x32xf32, #tpu.memory_space<vmem>>, vector<1x2x32xf32>
    %266 = vector.shape_cast %265 : vector<1x2x32xf32> to vector<2x32xf32>
    %c0_99 = arith.constant 0 : index
    %c0_100 = arith.constant 0 : index
    %267 = vector.load %arg10[%c0_99, %c0_100] : memref<16x128xf32, #tpu.memory_space<vmem>>, vector<2x128xf32>
    %cst_101 = arith.constant dense<0.000000e+00> : vector<2x128xf32>
    %268 = tpu.matmul %264, %262, %cst_101 {dimension_numbers = #tpu.dot_dimension_numbers<[1], [0], [0], [1], [0, 0, 1, 1], [], []>} : vector<2x32xf32>, vector<32x128xf32>, vector<2x128xf32> -> vector<2x128xf32>
    %269 = arith.addf %267, %268 : vector<2x128xf32>
    %270 = vector.extract_strided_slice %269 {offsets = [0, 0], sizes = [2, 32], strides = [1, 1]} : vector<2x128xf32> to vector<2x32xf32>
    %271 = arith.negf %270 : vector<2x32xf32>
    %272 = math.exp %271 : vector<2x32xf32>
    %cst_102 = arith.constant 1.000000e+00 : f32
    %273 = vector.broadcast %cst_102 : f32 to vector<2x32xf32>
    %274 = arith.addf %273, %272 : vector<2x32xf32>
    %275 = arith.divf %273, %274 : vector<2x32xf32>
    %276 = vector.extract_strided_slice %269 {offsets = [0, 32], sizes = [2, 32], strides = [1, 1]} : vector<2x128xf32> to vector<2x32xf32>
    %277 = arith.negf %276 : vector<2x32xf32>
    %278 = math.exp %277 : vector<2x32xf32>
    %cst_103 = arith.constant 1.000000e+00 : f32
    %279 = vector.broadcast %cst_103 : f32 to vector<2x32xf32>
    %280 = arith.addf %279, %278 : vector<2x32xf32>
    %281 = arith.divf %279, %280 : vector<2x32xf32>
    %282 = vector.extract_strided_slice %269 {offsets = [0, 64], sizes = [2, 32], strides = [1, 1]} : vector<2x128xf32> to vector<2x32xf32>
    %283 = math.tanh %282 : vector<2x32xf32>
    %284 = vector.extract_strided_slice %269 {offsets = [0, 96], sizes = [2, 32], strides = [1, 1]} : vector<2x128xf32> to vector<2x32xf32>
    %285 = arith.negf %284 : vector<2x32xf32>
    %286 = math.exp %285 : vector<2x32xf32>
    %cst_104 = arith.constant 1.000000e+00 : f32
    %287 = vector.broadcast %cst_104 : f32 to vector<2x32xf32>
    %288 = arith.addf %287, %286 : vector<2x32xf32>
    %289 = arith.divf %287, %288 : vector<2x32xf32>
    %290 = arith.mulf %281, %266 : vector<2x32xf32>
    %291 = arith.mulf %275, %283 : vector<2x32xf32>
    %292 = arith.addf %290, %291 : vector<2x32xf32>
    %293 = math.tanh %292 : vector<2x32xf32>
    %294 = arith.mulf %289, %293 : vector<2x32xf32>
    %c0_105 = arith.constant 0 : index
    %c0_106 = arith.constant 0 : index
    %295 = vector.load %arg7[%c0_105, %c0_106] : memref<16x32xf32, #tpu.memory_space<vmem>>, vector<2x32xf32>
    tpu.vector_store %arg7[%c0_105, %c0_106], %294 {strides = array<i32>} : memref<16x32xf32, #tpu.memory_space<vmem>>, vector<2x32xf32>,
    %c2_107 = arith.constant 2 : index
    %c0_108 = arith.constant 0 : index
    %296 = vector.load %arg10[%c2_107, %c0_108] : memref<16x128xf32, #tpu.memory_space<vmem>>, vector<2x128xf32>
    %cst_109 = arith.constant dense<0.000000e+00> : vector<2x128xf32>
    %297 = tpu.matmul %294, %262, %cst_109 {dimension_numbers = #tpu.dot_dimension_numbers<[1], [0], [0], [1], [0, 0, 1, 1], [], []>} : vector<2x32xf32>, vector<32x128xf32>, vector<2x128xf32> -> vector<2x128xf32>
    %298 = arith.addf %296, %297 : vector<2x128xf32>
    %299 = vector.extract_strided_slice %298 {offsets = [0, 0], sizes = [2, 32], strides = [1, 1]} : vector<2x128xf32> to vector<2x32xf32>
    %300 = arith.negf %299 : vector<2x32xf32>
    %301 = math.exp %300 : vector<2x32xf32>
    %cst_110 = arith.constant 1.000000e+00 : f32
    %302 = vector.broadcast %cst_110 : f32 to vector<2x32xf32>
    %303 = arith.addf %302, %301 : vector<2x32xf32>
    %304 = arith.divf %302, %303 : vector<2x32xf32>
    %305 = vector.extract_strided_slice %298 {offsets = [0, 32], sizes = [2, 32], strides = [1, 1]} : vector<2x128xf32> to vector<2x32xf32>
    %306 = arith.negf %305 : vector<2x32xf32>
    %307 = math.exp %306 : vector<2x32xf32>
    %cst_111 = arith.constant 1.000000e+00 : f32
    %308 = vector.broadcast %cst_111 : f32 to vector<2x32xf32>
    %309 = arith.addf %308, %307 : vector<2x32xf32>
    %310 = arith.divf %308, %309 : vector<2x32xf32>
    %311 = vector.extract_strided_slice %298 {offsets = [0, 64], sizes = [2, 32], strides = [1, 1]} : vector<2x128xf32> to vector<2x32xf32>
    %312 = math.tanh %311 : vector<2x32xf32>
    %313 = vector.extract_strided_slice %298 {offsets = [0, 96], sizes = [2, 32], strides = [1, 1]} : vector<2x128xf32> to vector<2x32xf32>
    %314 = arith.negf %313 : vector<2x32xf32>
    %315 = math.exp %314 : vector<2x32xf32>
    %cst_112 = arith.constant 1.000000e+00 : f32
    %316 = vector.broadcast %cst_112 : f32 to vector<2x32xf32>
    %317 = arith.addf %316, %315 : vector<2x32xf32>
    %318 = arith.divf %316, %317 : vector<2x32xf32>
    %319 = arith.mulf %310, %292 : vector<2x32xf32>
    %320 = arith.mulf %304, %312 : vector<2x32xf32>
    %321 = arith.addf %319, %320 : vector<2x32xf32>
    %322 = math.tanh %321 : vector<2x32xf32>
    %323 = arith.mulf %318, %322 : vector<2x32xf32>
    %c2_113 = arith.constant 2 : index
    %c0_114 = arith.constant 0 : index
    %324 = vector.load %arg7[%c2_113, %c0_114] : memref<16x32xf32, #tpu.memory_space<vmem>>, vector<2x32xf32>
    tpu.vector_store %arg7[%c2_113, %c0_114], %323 {strides = array<i32>} : memref<16x32xf32, #tpu.memory_space<vmem>>, vector<2x32xf32>,
    %c4_115 = arith.constant 4 : index
    %c0_116 = arith.constant 0 : index
    %325 = vector.load %arg10[%c4_115, %c0_116] : memref<16x128xf32, #tpu.memory_space<vmem>>, vector<2x128xf32>
    %cst_117 = arith.constant dense<0.000000e+00> : vector<2x128xf32>
    %326 = tpu.matmul %323, %262, %cst_117 {dimension_numbers = #tpu.dot_dimension_numbers<[1], [0], [0], [1], [0, 0, 1, 1], [], []>} : vector<2x32xf32>, vector<32x128xf32>, vector<2x128xf32> -> vector<2x128xf32>
    %327 = arith.addf %325, %326 : vector<2x128xf32>
    %328 = vector.extract_strided_slice %327 {offsets = [0, 0], sizes = [2, 32], strides = [1, 1]} : vector<2x128xf32> to vector<2x32xf32>
    %329 = arith.negf %328 : vector<2x32xf32>
    %330 = math.exp %329 : vector<2x32xf32>
    %cst_118 = arith.constant 1.000000e+00 : f32
    %331 = vector.broadcast %cst_118 : f32 to vector<2x32xf32>
    %332 = arith.addf %331, %330 : vector<2x32xf32>
    %333 = arith.divf %331, %332 : vector<2x32xf32>
    %334 = vector.extract_strided_slice %327 {offsets = [0, 32], sizes = [2, 32], strides = [1, 1]} : vector<2x128xf32> to vector<2x32xf32>
    %335 = arith.negf %334 : vector<2x32xf32>
    %336 = math.exp %335 : vector<2x32xf32>
    %cst_119 = arith.constant 1.000000e+00 : f32
    %337 = vector.broadcast %cst_119 : f32 to vector<2x32xf32>
    %338 = arith.addf %337, %336 : vector<2x32xf32>
    %339 = arith.divf %337, %338 : vector<2x32xf32>
    %340 = vector.extract_strided_slice %327 {offsets = [0, 64], sizes = [2, 32], strides = [1, 1]} : vector<2x128xf32> to vector<2x32xf32>
    %341 = math.tanh %340 : vector<2x32xf32>
    %342 = vector.extract_strided_slice %327 {offsets = [0, 96], sizes = [2, 32], strides = [1, 1]} : vector<2x128xf32> to vector<2x32xf32>
    %343 = arith.negf %342 : vector<2x32xf32>
    %344 = math.exp %343 : vector<2x32xf32>
    %cst_120 = arith.constant 1.000000e+00 : f32
    %345 = vector.broadcast %cst_120 : f32 to vector<2x32xf32>
    %346 = arith.addf %345, %344 : vector<2x32xf32>
    %347 = arith.divf %345, %346 : vector<2x32xf32>
    %348 = arith.mulf %339, %321 : vector<2x32xf32>
    %349 = arith.mulf %333, %341 : vector<2x32xf32>
    %350 = arith.addf %348, %349 : vector<2x32xf32>
    %351 = math.tanh %350 : vector<2x32xf32>
    %352 = arith.mulf %347, %351 : vector<2x32xf32>
    %c4_121 = arith.constant 4 : index
    %c0_122 = arith.constant 0 : index
    %353 = vector.load %arg7[%c4_121, %c0_122] : memref<16x32xf32, #tpu.memory_space<vmem>>, vector<2x32xf32>
    tpu.vector_store %arg7[%c4_121, %c0_122], %352 {strides = array<i32>} : memref<16x32xf32, #tpu.memory_space<vmem>>, vector<2x32xf32>,
    %c6_123 = arith.constant 6 : index
    %c0_124 = arith.constant 0 : index
    %354 = vector.load %arg10[%c6_123, %c0_124] : memref<16x128xf32, #tpu.memory_space<vmem>>, vector<2x128xf32>
    %cst_125 = arith.constant dense<0.000000e+00> : vector<2x128xf32>
    %355 = tpu.matmul %352, %262, %cst_125 {dimension_numbers = #tpu.dot_dimension_numbers<[1], [0], [0], [1], [0, 0, 1, 1], [], []>} : vector<2x32xf32>, vector<32x128xf32>, vector<2x128xf32> -> vector<2x128xf32>
    %356 = arith.addf %354, %355 : vector<2x128xf32>
    %357 = vector.extract_strided_slice %356 {offsets = [0, 0], sizes = [2, 32], strides = [1, 1]} : vector<2x128xf32> to vector<2x32xf32>
    %358 = arith.negf %357 : vector<2x32xf32>
    %359 = math.exp %358 : vector<2x32xf32>
    %cst_126 = arith.constant 1.000000e+00 : f32
    %360 = vector.broadcast %cst_126 : f32 to vector<2x32xf32>
    %361 = arith.addf %360, %359 : vector<2x32xf32>
    %362 = arith.divf %360, %361 : vector<2x32xf32>
    %363 = vector.extract_strided_slice %356 {offsets = [0, 32], sizes = [2, 32], strides = [1, 1]} : vector<2x128xf32> to vector<2x32xf32>
    %364 = arith.negf %363 : vector<2x32xf32>
    %365 = math.exp %364 : vector<2x32xf32>
    %cst_127 = arith.constant 1.000000e+00 : f32
    %366 = vector.broadcast %cst_127 : f32 to vector<2x32xf32>
    %367 = arith.addf %366, %365 : vector<2x32xf32>
    %368 = arith.divf %366, %367 : vector<2x32xf32>
    %369 = vector.extract_strided_slice %356 {offsets = [0, 64], sizes = [2, 32], strides = [1, 1]} : vector<2x128xf32> to vector<2x32xf32>
    %370 = math.tanh %369 : vector<2x32xf32>
    %371 = vector.extract_strided_slice %356 {offsets = [0, 96], sizes = [2, 32], strides = [1, 1]} : vector<2x128xf32> to vector<2x32xf32>
    %372 = arith.negf %371 : vector<2x32xf32>
    %373 = math.exp %372 : vector<2x32xf32>
    %cst_128 = arith.constant 1.000000e+00 : f32
    %374 = vector.broadcast %cst_128 : f32 to vector<2x32xf32>
    %375 = arith.addf %374, %373 : vector<2x32xf32>
    %376 = arith.divf %374, %375 : vector<2x32xf32>
    %377 = arith.mulf %368, %350 : vector<2x32xf32>
    %378 = arith.mulf %362, %370 : vector<2x32xf32>
    %379 = arith.addf %377, %378 : vector<2x32xf32>
    %380 = math.tanh %379 : vector<2x32xf32>
    %381 = arith.mulf %376, %380 : vector<2x32xf32>
    %c6_129 = arith.constant 6 : index
    %c0_130 = arith.constant 0 : index
    %382 = vector.load %arg7[%c6_129, %c0_130] : memref<16x32xf32, #tpu.memory_space<vmem>>, vector<2x32xf32>
    tpu.vector_store %arg7[%c6_129, %c0_130], %381 {strides = array<i32>} : memref<16x32xf32, #tpu.memory_space<vmem>>, vector<2x32xf32>,
    %c8_131 = arith.constant 8 : index
    %c0_132 = arith.constant 0 : index
    %383 = vector.load %arg10[%c8_131, %c0_132] : memref<16x128xf32, #tpu.memory_space<vmem>>, vector<2x128xf32>
    %cst_133 = arith.constant dense<0.000000e+00> : vector<2x128xf32>
    %384 = tpu.matmul %381, %262, %cst_133 {dimension_numbers = #tpu.dot_dimension_numbers<[1], [0], [0], [1], [0, 0, 1, 1], [], []>} : vector<2x32xf32>, vector<32x128xf32>, vector<2x128xf32> -> vector<2x128xf32>
    %385 = arith.addf %383, %384 : vector<2x128xf32>
    %386 = vector.extract_strided_slice %385 {offsets = [0, 0], sizes = [2, 32], strides = [1, 1]} : vector<2x128xf32> to vector<2x32xf32>
    %387 = arith.negf %386 : vector<2x32xf32>
    %388 = math.exp %387 : vector<2x32xf32>
    %cst_134 = arith.constant 1.000000e+00 : f32
    %389 = vector.broadcast %cst_134 : f32 to vector<2x32xf32>
    %390 = arith.addf %389, %388 : vector<2x32xf32>
    %391 = arith.divf %389, %390 : vector<2x32xf32>
    %392 = vector.extract_strided_slice %385 {offsets = [0, 32], sizes = [2, 32], strides = [1, 1]} : vector<2x128xf32> to vector<2x32xf32>
    %393 = arith.negf %392 : vector<2x32xf32>
    %394 = math.exp %393 : vector<2x32xf32>
    %cst_135 = arith.constant 1.000000e+00 : f32
    %395 = vector.broadcast %cst_135 : f32 to vector<2x32xf32>
    %396 = arith.addf %395, %394 : vector<2x32xf32>
    %397 = arith.divf %395, %396 : vector<2x32xf32>
    %398 = vector.extract_strided_slice %385 {offsets = [0, 64], sizes = [2, 32], strides = [1, 1]} : vector<2x128xf32> to vector<2x32xf32>
    %399 = math.tanh %398 : vector<2x32xf32>
    %400 = vector.extract_strided_slice %385 {offsets = [0, 96], sizes = [2, 32], strides = [1, 1]} : vector<2x128xf32> to vector<2x32xf32>
    %401 = arith.negf %400 : vector<2x32xf32>
    %402 = math.exp %401 : vector<2x32xf32>
    %cst_136 = arith.constant 1.000000e+00 : f32
    %403 = vector.broadcast %cst_136 : f32 to vector<2x32xf32>
    %404 = arith.addf %403, %402 : vector<2x32xf32>
    %405 = arith.divf %403, %404 : vector<2x32xf32>
    %406 = arith.mulf %397, %379 : vector<2x32xf32>
    %407 = arith.mulf %391, %399 : vector<2x32xf32>
    %408 = arith.addf %406, %407 : vector<2x32xf32>
    %409 = math.tanh %408 : vector<2x32xf32>
    %410 = arith.mulf %405, %409 : vector<2x32xf32>
    %c8_137 = arith.constant 8 : index
    %c0_138 = arith.constant 0 : index
    %411 = vector.load %arg7[%c8_137, %c0_138] : memref<16x32xf32, #tpu.memory_space<vmem>>, vector<2x32xf32>
    tpu.vector_store %arg7[%c8_137, %c0_138], %410 {strides = array<i32>} : memref<16x32xf32, #tpu.memory_space<vmem>>, vector<2x32xf32>,
    %c10_139 = arith.constant 10 : index
    %c0_140 = arith.constant 0 : index
    %412 = vector.load %arg10[%c10_139, %c0_140] : memref<16x128xf32, #tpu.memory_space<vmem>>, vector<2x128xf32>
    %cst_141 = arith.constant dense<0.000000e+00> : vector<2x128xf32>
    %413 = tpu.matmul %410, %262, %cst_141 {dimension_numbers = #tpu.dot_dimension_numbers<[1], [0], [0], [1], [0, 0, 1, 1], [], []>} : vector<2x32xf32>, vector<32x128xf32>, vector<2x128xf32> -> vector<2x128xf32>
    %414 = arith.addf %412, %413 : vector<2x128xf32>
    %415 = vector.extract_strided_slice %414 {offsets = [0, 0], sizes = [2, 32], strides = [1, 1]} : vector<2x128xf32> to vector<2x32xf32>
    %416 = arith.negf %415 : vector<2x32xf32>
    %417 = math.exp %416 : vector<2x32xf32>
    %cst_142 = arith.constant 1.000000e+00 : f32
    %418 = vector.broadcast %cst_142 : f32 to vector<2x32xf32>
    %419 = arith.addf %418, %417 : vector<2x32xf32>
    %420 = arith.divf %418, %419 : vector<2x32xf32>
    %421 = vector.extract_strided_slice %414 {offsets = [0, 32], sizes = [2, 32], strides = [1, 1]} : vector<2x128xf32> to vector<2x32xf32>
    %422 = arith.negf %421 : vector<2x32xf32>
    %423 = math.exp %422 : vector<2x32xf32>
    %cst_143 = arith.constant 1.000000e+00 : f32
    %424 = vector.broadcast %cst_143 : f32 to vector<2x32xf32>
    %425 = arith.addf %424, %423 : vector<2x32xf32>
    %426 = arith.divf %424, %425 : vector<2x32xf32>
    %427 = vector.extract_strided_slice %414 {offsets = [0, 64], sizes = [2, 32], strides = [1, 1]} : vector<2x128xf32> to vector<2x32xf32>
    %428 = math.tanh %427 : vector<2x32xf32>
    %429 = vector.extract_strided_slice %414 {offsets = [0, 96], sizes = [2, 32], strides = [1, 1]} : vector<2x128xf32> to vector<2x32xf32>
    %430 = arith.negf %429 : vector<2x32xf32>
    %431 = math.exp %430 : vector<2x32xf32>
    %cst_144 = arith.constant 1.000000e+00 : f32
    %432 = vector.broadcast %cst_144 : f32 to vector<2x32xf32>
    %433 = arith.addf %432, %431 : vector<2x32xf32>
    %434 = arith.divf %432, %433 : vector<2x32xf32>
    %435 = arith.mulf %426, %408 : vector<2x32xf32>
    %436 = arith.mulf %420, %428 : vector<2x32xf32>
    %437 = arith.addf %435, %436 : vector<2x32xf32>
    %438 = math.tanh %437 : vector<2x32xf32>
    %439 = arith.mulf %434, %438 : vector<2x32xf32>
    %c10_145 = arith.constant 10 : index
    %c0_146 = arith.constant 0 : index
    %440 = vector.load %arg7[%c10_145, %c0_146] : memref<16x32xf32, #tpu.memory_space<vmem>>, vector<2x32xf32>
    tpu.vector_store %arg7[%c10_145, %c0_146], %439 {strides = array<i32>} : memref<16x32xf32, #tpu.memory_space<vmem>>, vector<2x32xf32>,
    %c12_147 = arith.constant 12 : index
    %c0_148 = arith.constant 0 : index
    %441 = vector.load %arg10[%c12_147, %c0_148] : memref<16x128xf32, #tpu.memory_space<vmem>>, vector<2x128xf32>
    %cst_149 = arith.constant dense<0.000000e+00> : vector<2x128xf32>
    %442 = tpu.matmul %439, %262, %cst_149 {dimension_numbers = #tpu.dot_dimension_numbers<[1], [0], [0], [1], [0, 0, 1, 1], [], []>} : vector<2x32xf32>, vector<32x128xf32>, vector<2x128xf32> -> vector<2x128xf32>
    %443 = arith.addf %441, %442 : vector<2x128xf32>
    %444 = vector.extract_strided_slice %443 {offsets = [0, 0], sizes = [2, 32], strides = [1, 1]} : vector<2x128xf32> to vector<2x32xf32>
    %445 = arith.negf %444 : vector<2x32xf32>
    %446 = math.exp %445 : vector<2x32xf32>
    %cst_150 = arith.constant 1.000000e+00 : f32
    %447 = vector.broadcast %cst_150 : f32 to vector<2x32xf32>
    %448 = arith.addf %447, %446 : vector<2x32xf32>
    %449 = arith.divf %447, %448 : vector<2x32xf32>
    %450 = vector.extract_strided_slice %443 {offsets = [0, 32], sizes = [2, 32], strides = [1, 1]} : vector<2x128xf32> to vector<2x32xf32>
    %451 = arith.negf %450 : vector<2x32xf32>
    %452 = math.exp %451 : vector<2x32xf32>
    %cst_151 = arith.constant 1.000000e+00 : f32
    %453 = vector.broadcast %cst_151 : f32 to vector<2x32xf32>
    %454 = arith.addf %453, %452 : vector<2x32xf32>
    %455 = arith.divf %453, %454 : vector<2x32xf32>
    %456 = vector.extract_strided_slice %443 {offsets = [0, 64], sizes = [2, 32], strides = [1, 1]} : vector<2x128xf32> to vector<2x32xf32>
    %457 = math.tanh %456 : vector<2x32xf32>
    %458 = vector.extract_strided_slice %443 {offsets = [0, 96], sizes = [2, 32], strides = [1, 1]} : vector<2x128xf32> to vector<2x32xf32>
    %459 = arith.negf %458 : vector<2x32xf32>
    %460 = math.exp %459 : vector<2x32xf32>
    %cst_152 = arith.constant 1.000000e+00 : f32
    %461 = vector.broadcast %cst_152 : f32 to vector<2x32xf32>
    %462 = arith.addf %461, %460 : vector<2x32xf32>
    %463 = arith.divf %461, %462 : vector<2x32xf32>
    %464 = arith.mulf %455, %437 : vector<2x32xf32>
    %465 = arith.mulf %449, %457 : vector<2x32xf32>
    %466 = arith.addf %464, %465 : vector<2x32xf32>
    %467 = math.tanh %466 : vector<2x32xf32>
    %468 = arith.mulf %463, %467 : vector<2x32xf32>
    %c12_153 = arith.constant 12 : index
    %c0_154 = arith.constant 0 : index
    %469 = vector.load %arg7[%c12_153, %c0_154] : memref<16x32xf32, #tpu.memory_space<vmem>>, vector<2x32xf32>
    tpu.vector_store %arg7[%c12_153, %c0_154], %468 {strides = array<i32>} : memref<16x32xf32, #tpu.memory_space<vmem>>, vector<2x32xf32>,
    %c14_155 = arith.constant 14 : index
    %c0_156 = arith.constant 0 : index
    %470 = vector.load %arg10[%c14_155, %c0_156] : memref<16x128xf32, #tpu.memory_space<vmem>>, vector<2x128xf32>
    %cst_157 = arith.constant dense<0.000000e+00> : vector<2x128xf32>
    %471 = tpu.matmul %468, %262, %cst_157 {dimension_numbers = #tpu.dot_dimension_numbers<[1], [0], [0], [1], [0, 0, 1, 1], [], []>} : vector<2x32xf32>, vector<32x128xf32>, vector<2x128xf32> -> vector<2x128xf32>
    %472 = arith.addf %470, %471 : vector<2x128xf32>
    %473 = vector.extract_strided_slice %472 {offsets = [0, 0], sizes = [2, 32], strides = [1, 1]} : vector<2x128xf32> to vector<2x32xf32>
    %474 = arith.negf %473 : vector<2x32xf32>
    %475 = math.exp %474 : vector<2x32xf32>
    %cst_158 = arith.constant 1.000000e+00 : f32
    %476 = vector.broadcast %cst_158 : f32 to vector<2x32xf32>
    %477 = arith.addf %476, %475 : vector<2x32xf32>
    %478 = arith.divf %476, %477 : vector<2x32xf32>
    %479 = vector.extract_strided_slice %472 {offsets = [0, 32], sizes = [2, 32], strides = [1, 1]} : vector<2x128xf32> to vector<2x32xf32>
    %480 = arith.negf %479 : vector<2x32xf32>
    %481 = math.exp %480 : vector<2x32xf32>
    %cst_159 = arith.constant 1.000000e+00 : f32
    %482 = vector.broadcast %cst_159 : f32 to vector<2x32xf32>
    %483 = arith.addf %482, %481 : vector<2x32xf32>
    %484 = arith.divf %482, %483 : vector<2x32xf32>
    %485 = vector.extract_strided_slice %472 {offsets = [0, 64], sizes = [2, 32], strides = [1, 1]} : vector<2x128xf32> to vector<2x32xf32>
    %486 = math.tanh %485 : vector<2x32xf32>
    %487 = vector.extract_strided_slice %472 {offsets = [0, 96], sizes = [2, 32], strides = [1, 1]} : vector<2x128xf32> to vector<2x32xf32>
    %488 = arith.negf %487 : vector<2x32xf32>
    %489 = math.exp %488 : vector<2x32xf32>
    %cst_160 = arith.constant 1.000000e+00 : f32
    %490 = vector.broadcast %cst_160 : f32 to vector<2x32xf32>
    %491 = arith.addf %490, %489 : vector<2x32xf32>
    %492 = arith.divf %490, %491 : vector<2x32xf32>
    %493 = arith.mulf %484, %466 : vector<2x32xf32>
    %494 = arith.mulf %478, %486 : vector<2x32xf32>
    %495 = arith.addf %493, %494 : vector<2x32xf32>
    %496 = math.tanh %495 : vector<2x32xf32>
    %497 = arith.mulf %492, %496 : vector<2x32xf32>
    %c14_161 = arith.constant 14 : index
    %c0_162 = arith.constant 0 : index
    %498 = vector.load %arg7[%c14_161, %c0_162] : memref<16x32xf32, #tpu.memory_space<vmem>>, vector<2x32xf32>
    tpu.vector_store %arg7[%c14_161, %c0_162], %497 {strides = array<i32>} : memref<16x32xf32, #tpu.memory_space<vmem>>, vector<2x32xf32>,
    %c1_163 = arith.constant 1 : index
    %c0_164 = arith.constant 0 : index
    %c0_165 = arith.constant 0 : index
    %499 = vector.load %arg8[%c1_163, %c0_164, %c0_165] : memref<2x2x32xf32, #tpu.memory_space<vmem>>, vector<1x2x32xf32>
    %500 = vector.shape_cast %499 : vector<1x2x32xf32> to vector<2x32xf32>
    %501 = vector.shape_cast %497 : vector<2x32xf32> to vector<1x2x32xf32>
    tpu.vector_store %arg8[%c1_163, %c0_164, %c0_165], %501 {strides = array<i32>} : memref<2x2x32xf32, #tpu.memory_space<vmem>>, vector<1x2x32xf32>,
    %c1_166 = arith.constant 1 : index
    %c0_167 = arith.constant 0 : index
    %c0_168 = arith.constant 0 : index
    %502 = vector.load %arg9[%c1_166, %c0_167, %c0_168] : memref<2x2x32xf32, #tpu.memory_space<vmem>>, vector<1x2x32xf32>
    %503 = vector.shape_cast %502 : vector<1x2x32xf32> to vector<2x32xf32>
    %504 = vector.shape_cast %495 : vector<2x32xf32> to vector<1x2x32xf32>
    tpu.vector_store %arg9[%c1_166, %c0_167, %c0_168], %504 {strides = array<i32>} : memref<2x2x32xf32, #tpu.memory_space<vmem>>, vector<1x2x32xf32>,
    return
  }
}

</mosaic_0001>

<bundles_post_ra>
// kernel: tpu_custom_call.1
= control target key start
LH: loop header
LB: loop body
LE: loop exit
PB: predicated region body
PF: predicated region fallthrough
CT: control target
= control target key end

     0   :  { %15 = vsyncpa [#allocation4], 0  ;;  %s3225_s0 = inlined_call_operand.hbm [shape: f32[16,64], index: 0, kind: input, shape index: {}]   ;;  %s3226_s1 = inlined_call_operand.hbm [shape: f32[64,128], index: 1, kind: input, shape index: {}]   ;;  %s3227_s2 = inlined_call_operand.hbm [shape: f32[1,32,128], index: 2, kind: input, shape index: {}]   ;;  %s3228_s3 = inlined_call_operand.hbm [shape: f32[2,32,128], index: 3, kind: input, shape index: {}]   ;;  %s3229_s4 = inlined_call_operand.vmem [shape: f32[2,1,128], index: 4, kind: input, shape index: {}]   ;;  %s3230_s5 = inlined_call_operand.vmem [shape: f32[2,2,32], index: 5, kind: input, shape index: {}]   ;;  %s3231_s6 = inlined_call_operand.vmem [shape: f32[2,2,32], index: 6, kind: input, shape index: {}]   ;;  %s3232_s7 = inlined_call_operand.hbm [shape: f32[16,32], index: 7, kind: output, shape index: {0}]   ;;  %s3233_s8 = inlined_call_operand.hbm [shape: f32[2,2,32], index: 8, kind: output, shape index: {1}]   ;;  %s3234_s9 = inlined_call_operand.hbm [shape: f32[2,2,32], index: 9, kind: output, shape index: {2}]  }
   0x1   :  { %16 = vsyncpa [#allocation7], 0 }
   0x2   :  { %17 = vsyncpa [#allocation10], 0 }
   0x3   :  { %18 = vsyncpa [#allocation5], 0 }
   0x4   :  { %19 = vsyncpa [#allocation13], 0  ;;  %s2794_s30 = smov [#allocation6]   ;;  %s2795_s11 = smov [#allocation3]  }
   0x5   :  { %s37_s10 = sshll.u32 %s2794_s30, 4  ;;  %s25_s12 = sshll.u32 %s2795_s11, 4  ;;  %s38_s10 = int_to_ptr.vmem [resolvable:$true] %s37_s10  ;;  %s2860_s12 = int_to_ptr.vmem [resolvable:$true] %s25_s12 }
   0x6   :  { %s2630_s15 = scalar_lea.hbm %s3226_s1, 1024 }
   0x7   :  { %p2631_p0 = scmp.ne.s32.totalorder %s3226_s1, %s2630_s15  ;;  %p2634_p1 = scmp.lt.u32.totalorder %s2630_s15, %s3226_s1 }
   0x9   :  { %p2636_p2 = pnand %p2634_p1, %p2631_p0 }
   0xb   :  { %2639 = shalt.err (!%p2636_p2)
}
   0xc   :  { %s2640_s20 = scalar_lea.vmem %s38_s10, 1024  ;;  %p2645_p4 = scmp.lt.s32.totalorder %s38_s10, %s38_s10 }
   0xd   :  { %p2641_p3 = scmp.ne.s32.totalorder %s38_s10, %s2640_s20  ;;  %p2646_p5 = scmp.lt.s32.totalorder %s2640_s20, %s2640_s20 }
   0xf   :  { %p2647_p6 = por %p2646_p5, %p2645_p4 }
  0x11   :  { %p2648_p7 = pnand %p2647_p6, %p2641_p3 }
  0x13   :  { %2651 = shalt.err (!%p2648_p7)
}
  0x14   :  { %s2796_s21 = smov 128   ;;  %s2797_s22 = smov 8  }
  0x15   :  { %43 = dma.hbm_to_vmem [thread:$0]  %s3226_s1, 1024, %s38_s10, [#allocation7], %s2796_s21, %s2796_s21, %s2797_s22  }
  0x16   :  { %s2652_s27 = scalar_lea.hbm %s3225_s0, 256 }
  0x17   :  { %p2653_p8 = scmp.ne.s32.totalorder %s3225_s0, %s2652_s27  ;;  %p2656_p9 = scmp.lt.u32.totalorder %s2652_s27, %s3225_s0 }
  0x19   :  { %p2658_p10 = pnand %p2656_p9, %p2653_p8 }
  0x1b   :  { %2661 = shalt.err (!%p2658_p10)
}
  0x1c   :  { %s2662_s13 = scalar_lea.vmem %s2860_s12, 256  ;;  %p2667_p12 = scmp.lt.s32.totalorder %s2860_s12, %s2860_s12 }
  0x1d   :  { %p2663_p11 = scmp.ne.s32.totalorder %s2860_s12, %s2662_s13  ;;  %p2668_p13 = scmp.lt.s32.totalorder %s2662_s13, %s2662_s13 }
  0x1f   :  { %p2669_p0 = por %p2668_p13, %p2667_p12 }
  0x21   :  { %p2670_p1 = pnand %p2669_p0, %p2663_p11 }
  0x23   :  { %2673 = shalt.err (!%p2670_p1)
}
  0x24   :  { %31 = dma.hbm_to_vmem [thread:$0]  %s3225_s0, 256, %s2860_s12, [#allocation4], %s2796_s21, %s2796_s21, %s2797_s22  }
  0x25   :  { %s2798_s14 = smov [#allocation8]   ;;  %s2799_s16 = smov [#allocation9]  }
  0x26   :  { %s49_s15 = sshll.u32 %s2798_s14, 4  ;;  %s61_s17 = sshll.u32 %s2799_s16, 4  ;;  %s50_s15 = int_to_ptr.vmem [resolvable:$true] %s49_s15  ;;  %s2897_s17 = int_to_ptr.vmem [resolvable:$true] %s61_s17 }
  0x27   :  { %s2674_s20 = scalar_lea.hbm %s3227_s2, 512 }
  0x28   :  { %p2675_p2 = scmp.ne.s32.totalorder %s3227_s2, %s2674_s20  ;;  %p2678_p3 = scmp.lt.u32.totalorder %s2674_s20, %s3227_s2 }
  0x2a   :  { %p2680_p4 = pnand %p2678_p3, %p2675_p2 }
  0x2c   :  { %2683 = shalt.err (!%p2680_p4)
}
  0x2d   :  { %s2684_s0 = scalar_lea.vmem %s50_s15, 512  ;;  %p2689_p6 = scmp.lt.s32.totalorder %s50_s15, %s50_s15 }
  0x2e   :  { %p2685_p5 = scmp.ne.s32.totalorder %s50_s15, %s2684_s0  ;;  %p2690_p7 = scmp.lt.s32.totalorder %s2684_s0, %s2684_s0 }
  0x30   :  { %p2691_p8 = por %p2690_p7, %p2689_p6 }
  0x32   :  { %p2692_p9 = pnand %p2691_p8, %p2685_p5 }
  0x34   :  { %2695 = shalt.err (!%p2692_p9)
}
  0x35   :  { %55 = dma.hbm_to_vmem [thread:$0]  %s3227_s2, 512, %s50_s15, [#allocation7], %s2796_s21, %s2796_s21, %s2797_s22  }
  0x36   :  { %s2696_s30 = scalar_lea.hbm %s3228_s3, 1024 }
  0x37   :  { %p2697_p10 = scmp.ne.s32.totalorder %s3228_s3, %s2696_s30  ;;  %p2700_p11 = scmp.lt.u32.totalorder %s2696_s30, %s3228_s3 }
  0x39   :  { %p2702_p12 = pnand %p2700_p11, %p2697_p10 }
  0x3b   :  { %2705 = shalt.err (!%p2702_p12)
}
  0x3c   :  { %s2706_s14 = scalar_lea.vmem %s2897_s17, 1024  ;;  %p2711_p0 = scmp.lt.s32.totalorder %s2897_s17, %s2897_s17 }
  0x3d   :  { %p2707_p13 = scmp.ne.s32.totalorder %s2897_s17, %s2706_s14  ;;  %p2712_p1 = scmp.lt.s32.totalorder %s2706_s14, %s2706_s14 }
  0x3f   :  { %p2713_p2 = por %p2712_p1, %p2711_p0 }
  0x41   :  { %p2714_p3 = pnand %p2713_p2, %p2707_p13 }
  0x43   :  { %2717 = shalt.err (!%p2714_p3)
}
  0x44   :  { %67 = dma.hbm_to_vmem [thread:$0]  %s3228_s3, 1024, %s2897_s17, [#allocation10], %s2796_s21, %s2796_s21, %s2797_s22  }
  0x45   :  { %2784 = dma.done.wait [#allocation4], 256  }
  0x46   :  { %2785 = vsyncadd [#allocation4], 4294967040 }
  0x47   :  { %2786 = dma.done.wait [#allocation7], 1536  }
  0x48   :  { %2787 = vsyncadd [#allocation7], 4294965760 }
  0x49   :  { %2788 = dma.done.wait [#allocation10], 1024  }
  0x4a   :  { %2789 = vsyncadd [#allocation10], 4294966272  ;;  %v2800_v0 = vmov 0.0|0.0   ;;  %vm2801_vm0 = vmmov 0   ;;  %v2802_v1 = vmov 0.0   ;;  %v88_v2 = vld [vmem:[#allocation6] sm:$0xff] }
  0x4b   :  { %2382 = vmatprep.subr.bf16.mxu1 %v2800_v0  ;;  %2187 = vmatprep.mubr.msk.f32.mxu1 %vm2801_vm0, %v2802_v1  ;;  %v89_v3 = vld [vmem:[#allocation6 + $0x8] sm:$0xff]  ;;  %v90_v4 = vld [vmem:[#allocation6 + $0x10] sm:$0xff]  ;;  %vm103_vm1 = vcmask 523264   ;;  %v91_v6 = vld [vmem:[#allocation6 + $0x18] sm:$0xff]  ;;  %vm194_vm2 = vcmask 261120   ;;  %s2803_s19 = smov 64  }
  0x4c   :  { %v2366_v5 = vpack.c.bf16 %v89_v3, %v88_v2  ;;  %v2370_v7 = vpack.c.bf16 %v91_v6, %v90_v4  ;;  %v92_v8 = vld [vmem:[#allocation6 + $0x20] sm:$0xff]  ;;  %v93_v9 = vld [vmem:[#allocation6 + $0x28] sm:$0xff]  ;;  %v86_v10 = vld [vmem:[#allocation3] sm:$0xff]  ;;  %s2804_s24 = smov 32   ;;  %vm301_vm3 = vcmask 254976   ;;  %s2806_s27 = smov [#allocation12]  }
  0x4d   :  { %2176 = vmatprep.mubr.msk.f32.mxu0 %vm103_vm1, %v86_v10  ;;  %v187_v11 = vld [vmem:[#allocation9] sm:$0xff]  ;;  %v188_v12 = vld [vmem:[#allocation9 + $0x8] sm:$0xff]  ;;  %v189_v14 = vld [vmem:[#allocation9 + $0x10] sm:$0xff]  ;;  %v2374_v16 = vpack.c.bf16 %v93_v9, %v92_v8  ;;  %s1990_s28 = sshll.u32 %s2806_s27, 4  ;;  %s2807_s29 = smov [#allocation11]   ;;  %s1991_s28 = int_to_ptr.vmem [resolvable:$true] %s1990_s28 }
  0x4e   :  { %2367 = vmatprep.subr.bf16.mxu0 %v2366_v5  ;;  %v2938_v13 = vpack.c.bf16 %v188_v12, %v187_v11  ;;  %v190_v15 = vld [vmem:[#allocation9 + $0x18] sm:$0xff]  ;;  %v94_v17 = vld [vmem:[#allocation6 + $0x30] sm:$0xff]  ;;  %v191_v21 = vld [vmem:[%s3230_s5] sm:$0x3]  ;;  %s1978_s30 = sshll.u32 %s2807_s29, 4  ;;  %s2808_s11 = smov [#allocation14]   ;;  %s3163_s30 = int_to_ptr.vmem [resolvable:$true] %s1978_s30 }
  0x4f   :  { %2369 = vmatpush3.bf16.msra.mxu0 %v2366_v5  ;;  %v95_v18 = vld [vmem:[#allocation6 + $0x38] sm:$0xff]  ;;  %v2941_v19 = vpack.c.bf16 %v190_v15, %v189_v14  ;;  %v2023_v25 = vld [vmem:[%s3229_s4] ss:$0 sm:$0xff]  ;;  %s2002_s13 = sshll.u32 %s2808_s11, 4  ;;  %s2718_s1 = scalar_lea.vmem %s1991_s28, 64  ;;  %s3167_s13 = int_to_ptr.vmem [resolvable:$true] %s2002_s13 }
  0x50   :  { %2371 = vmatprep.subr.bf16.mxu0 %v2370_v7  ;;  %2384 = vmatpush3.bf16.msra.mxu1 %v2938_v13  ;;  %v2378_v20 = vpack.c.bf16 %v95_v18, %v94_v17  ;;  %v87_v22 = vld [vmem:[#allocation3 + $0x8] sm:$0xff]  ;;  %v192_v33 = vld [vmem:[%s3231_s6] sm:$0x3]  ;;  %p2719_p4 = scmp.ne.s32.totalorder %s1991_s28, %s2718_s1  ;;  %p2723_p5 = scmp.lt.s32.totalorder %s1991_s28, %s1991_s28 }
  0x51   :  { %2385 = vmatprep.subr.bf16.mxu1 %v2800_v0  ;;  %p2724_p6 = scmp.lt.s32.totalorder %s2718_s1, %s2718_s1 }
  0x53   :  { %2373 = vmatpush3.bf16.msra.mxu0 %v2370_v7  ;;  %p2725_p7 = por %p2724_p6, %p2723_p5 }
  0x54   :  { %2375 = vmatprep.subr.bf16.mxu0 %v2374_v16  ;;  %2387 = vmatpush3.bf16.msra.mxu1 %v2941_v19 }
  0x55   :  { %2388 = vmatprep.subr.bf16.mxu1 %v2800_v0  ;;  %p2726_p8 = pnand %p2725_p7, %p2719_p4 }
  0x57   :  { %2377 = vmatpush3.bf16.msra.mxu0 %v2374_v16  ;;  %2188 = vmatmul.mubr.msk.f32.vlgmr.msra.gmra.mrb[0].mxu1 %vm194_vm2, %v191_v21 }
  0x58   :  { %2379 = vmatprep.subr.bf16.mxu0 %v2378_v20  ;;  %2390 = vmatpush3.bf16.msra.mxu1 %v2938_v13 }
  0x59   :  { %2198 = vmatprep.mubr.msk.f32.mxu1 %vm2801_vm0, %v2802_v1  ;;  %2391 = vmatprep.subr.bf16.mxu1 %v2800_v0 }
  0x5b   :  { %2381 = vmatpush3.bf16.msra.mxu0 %v2378_v20 }
  0x5c   :  { %2394 = vmatprep.subr.bf16.mxu0 %v2800_v0  ;;  %2393 = vmatpush3.bf16.msra.mxu1 %v2941_v19 }
  0x5d   :  { %2400 = vmatprep.subr.bf16.mxu1 %v2800_v0 }
  0x5e   :  { %2177 = vmatmul.mubr.msk.f32.vlgmr.msra.gmra.mrb[0].mxu0 %vm103_vm1, %v87_v22 }
  0x5f   :  { %2396 = vmatpush3.bf16.msra.mxu0 %v2938_v13  ;;  %2209 = vmatprep.mubr.msk.f32.mxu0 %vm2801_vm0, %v2802_v1 }
  0x60   :  { %2397 = vmatprep.subr.bf16.mxu0 %v2800_v0 }
  0x63   :  { %2399 = vmatpush3.bf16.msra.mxu0 %v2941_v19 }
  0x64   :  { %2406 = vmatprep.subr.bf16.mxu0 %v2800_v0 }
 0x12a   :  { %v264_v23 = vpop.f32.mrb[0].mxu1 }
 0x12b   :  { %v2189_v24 = vpop.f32.mrb[1].mxu1 }
 0x131   :  { %v2178_v26 = vpop.f32.mrb[0].mxu0 }
 0x132   :  { %v182_v27 = vadd.f32 %v2178_v26, %v2023_v25  ;;  %v176_v28 = vpop.f32.mrb[1].mxu0 }
 0x133   :  { %v177_v29 = vadd.f32 %v2023_v25, %v176_v28 }
 0x134   :  { %186 = vst [vmem:[#allocation2 + $0x8] sm:$0xff] %v182_v27 }
 0x135   :  { %185 = vst [vmem:[#allocation2] sm:$0xff] %v177_v29 }
 0x13c   :  { %v193_v30 = vld [vmem:[#allocation2] sm:$0x3]  ;;  %v303_v48 = vld [vmem:[#allocation2 + $0x2] sm:$0x3]  ;;  %v406_v4 = vld [vmem:[#allocation2 + $0x4] sm:$0x3] }
 0x13d   :  { %v268_v31 = vadd.f32 %v264_v23, %v193_v30  ;;  %v509_v24 = vld [vmem:[#allocation2 + $0x6] sm:$0x3] }
 0x13f   :  { %2502 = vtanh.f32 %v268_v31  ;;  %v2027_v34 = vmul.f32 -1.442695, %v268_v31 }
 0x141   :  { %2504 = vpow2.f32 %v2027_v34 }
 0x149   :  { %v2503_v32 = vpop.eup %2502 }
 0x14a   :  { %282 = vrot.lane.b32.xlu0 %v2503_v32, %s2803_s19 }
 0x14b   :  { %v2505_v35 = vpop.eup %2504 }
 0x14c   :  { %v272_v36 = vadd.f32 1.0, %v2505_v35 }
 0x14e   :  { %277 = vrot.lane.b32.xlu0 %v192_v33, %s2804_s24  ;;  %2506 = vrcp.f32 %v272_v36 }
 0x158   :  { %v2507_v37 = vpop.eup %2506 }
 0x1bc   :  { %v283_v38 = vpop.permute.xlu0 %282 }
 0x1bd   :  { %v285_v39 = vmul.f32 %v2507_v37, %v283_v38 }
 0x1bf   :  { %287 = vrot.lane.b32.xlu1 %v285_v39, %s2804_s24 }
 0x1c0   :  { %v278_v40 = vpop.permute.xlu0 %277 }
 0x1c1   :  { %v280_v41 = vmul.f32 %v2507_v37, %v278_v40 }
 0x231   :  { %v288_v42 = vpop.permute.xlu1 %287 }
 0x232   :  { %v290_v43 = vadd.f32 %v288_v42, %v280_v41  ;;  %v612_v42 = vld [vmem:[#allocation2 + $0x8] sm:$0x3] }
 0x234   :  { %2508 = vtanh.f32 %v290_v43 }
 0x23e   :  { %v2509_v44 = vpop.eup %2508 }
 0x23f   :  { %293 = vrot.lane.b32.xlu1 %v2509_v44, %s2803_s19 }
 0x2b1   :  { %v294_v45 = vpop.permute.xlu1 %293 }
 0x2b2   :  { %v296_v46 = vmul.f32 %v2507_v37, %v294_v45 }
 0x2b4   :  { %298 = vrot.lane.b32.xlu0 %v296_v46, %s2804_s24 }
 0x326   :  { %v299_v47 = vpop.permute.xlu0 %298 }
 0x327   :  { %302 = vst.msk [vmem:[#allocation11] sm:$0x3] %vm301_vm3, %v299_v47  ;;  %2199 = vmatmul.mubr.msk.f32.vlgmr.msra.gmra.mrb[2].mxu1 %vm194_vm2, %v299_v47 }
 0x328   :  { %2402 = vmatpush3.bf16.msra.mxu1 %v2938_v13  ;;  %2220 = vmatprep.mubr.msk.f32.mxu1 %vm2801_vm0, %v2802_v1 }
 0x329   :  { %2403 = vmatprep.subr.bf16.mxu1 %v2800_v0 }
 0x32c   :  { %2405 = vmatpush3.bf16.msra.mxu1 %v2941_v19 }
 0x32d   :  { %2412 = vmatprep.subr.bf16.mxu1 %v2800_v0 }
 0x3fa   :  { %v372_v49 = vpop.f32.mrb[2].mxu1 }
 0x3fb   :  { %v376_v50 = vadd.f32 %v372_v49, %v303_v48  ;;  %v2200_v51 = vpop.f32.mrb[3].mxu1 }
 0x3fd   :  { %2510 = vtanh.f32 %v376_v50  ;;  %v2029_v53 = vmul.f32 -1.442695, %v376_v50 }
 0x3ff   :  { %2512 = vpow2.f32 %v2029_v53 }
 0x407   :  { %v2511_v52 = vpop.eup %2510 }
 0x408   :  { %386 = vrot.lane.b32.xlu1 %v2511_v52, %s2803_s19 }
 0x409   :  { %v2513_v54 = vpop.eup %2512 }
 0x40a   :  { %v380_v55 = vadd.f32 1.0, %v2513_v54 }
 0x40c   :  { %2514 = vrcp.f32 %v380_v55 }
 0x416   :  { %v2515_v56 = vpop.eup %2514 }
 0x417   :  { %v384_v59 = vmul.f32 %v2515_v56, %v290_v43 }
 0x47a   :  { %v387_v57 = vpop.permute.xlu1 %386 }
 0x47b   :  { %v389_v58 = vmul.f32 %v2515_v56, %v387_v57 }
 0x47d   :  { %391 = vrot.lane.b32.xlu0 %v389_v58, %s2804_s24 }
 0x4ef   :  { %v392_v60 = vpop.permute.xlu0 %391 }
 0x4f0   :  { %v394_v61 = vadd.f32 %v392_v60, %v384_v59  ;;  %v715_v60 = vld [vmem:[#allocation2 + $0xa] sm:$0x3] }
 0x4f2   :  { %2516 = vtanh.f32 %v394_v61 }
 0x4fc   :  { %v2517_v62 = vpop.eup %2516 }
 0x4fd   :  { %397 = vrot.lane.b32.xlu1 %v2517_v62, %s2803_s19 }
 0x56f   :  { %v398_v63 = vpop.permute.xlu1 %397 }
 0x570   :  { %v400_v2 = vmul.f32 %v2515_v56, %v398_v63 }
 0x572   :  { %402 = vrot.lane.b32.xlu0 %v400_v2, %s2804_s24 }
 0x5e4   :  { %v403_v3 = vpop.permute.xlu0 %402 }
 0x5e5   :  { %405 = vst.msk [vmem:[#allocation11 + $0x2] sm:$0x3] %vm301_vm3, %v403_v3  ;;  %2210 = vmatmul.mubr.msk.f32.vlgmr.msra.gmra.mrb[2].mxu0 %vm194_vm2, %v403_v3 }
 0x5e6   :  { %2408 = vmatpush3.bf16.msra.mxu0 %v2938_v13  ;;  %2231 = vmatprep.mubr.msk.f32.mxu0 %vm2801_vm0, %v2802_v1 }
 0x5e7   :  { %2409 = vmatprep.subr.bf16.mxu0 %v2800_v0 }
 0x5ea   :  { %2411 = vmatpush3.bf16.msra.mxu0 %v2941_v19 }
 0x5eb   :  { %2418 = vmatprep.subr.bf16.mxu0 %v2800_v0 }
 0x6b8   :  { %v475_v5 = vpop.f32.mrb[2].mxu0 }
 0x6b9   :  { %v479_v6 = vadd.f32 %v475_v5, %v406_v4  ;;  %v2211_v7 = vpop.f32.mrb[3].mxu0 }
 0x6bb   :  { %2518 = vtanh.f32 %v479_v6  ;;  %v2031_v9 = vmul.f32 -1.442695, %v479_v6 }
 0x6bd   :  { %2520 = vpow2.f32 %v2031_v9 }
 0x6c5   :  { %v2519_v8 = vpop.eup %2518 }
 0x6c6   :  { %489 = vrot.lane.b32.xlu1 %v2519_v8, %s2803_s19 }
 0x6c7   :  { %v2521_v10 = vpop.eup %2520 }
 0x6c8   :  { %v483_v11 = vadd.f32 1.0, %v2521_v10 }
 0x6ca   :  { %2522 = vrcp.f32 %v483_v11 }
 0x6d4   :  { %v2523_v12 = vpop.eup %2522 }
 0x6d5   :  { %v487_v16 = vmul.f32 %v2523_v12, %v394_v61 }
 0x738   :  { %v490_v14 = vpop.permute.xlu1 %489 }
 0x739   :  { %v492_v15 = vmul.f32 %v2523_v12, %v490_v14 }
 0x73b   :  { %494 = vrot.lane.b32.xlu0 %v492_v15, %s2804_s24 }
 0x7ad   :  { %v495_v17 = vpop.permute.xlu0 %494 }
 0x7ae   :  { %v497_v18 = vadd.f32 %v495_v17, %v487_v16  ;;  %v818_v16 = vld [vmem:[#allocation2 + $0xc] sm:$0x3] }
 0x7b0   :  { %2524 = vtanh.f32 %v497_v18 }
 0x7ba   :  { %v2525_v20 = vpop.eup %2524 }
 0x7bb   :  { %500 = vrot.lane.b32.xlu1 %v2525_v20, %s2803_s19 }
 0x82d   :  { %v501_v21 = vpop.permute.xlu1 %500 }
 0x82e   :  { %v503_v22 = vmul.f32 %v2523_v12, %v501_v21 }
 0x830   :  { %505 = vrot.lane.b32.xlu0 %v503_v22, %s2804_s24 }
 0x8a2   :  { %v506_v23 = vpop.permute.xlu0 %505 }
 0x8a3   :  { %508 = vst.msk [vmem:[#allocation11 + $0x4] sm:$0x3] %vm301_vm3, %v506_v23  ;;  %2221 = vmatmul.mubr.msk.f32.vlgmr.msra.gmra.mrb[4].mxu1 %vm194_vm2, %v506_v23 }
 0x8a4   :  { %2414 = vmatpush3.bf16.msra.mxu1 %v2938_v13  ;;  %2242 = vmatprep.mubr.msk.f32.mxu1 %vm2801_vm0, %v2802_v1 }
 0x8a5   :  { %2415 = vmatprep.subr.bf16.mxu1 %v2800_v0 }
 0x8a8   :  { %2417 = vmatpush3.bf16.msra.mxu1 %v2941_v19 }
 0x8a9   :  { %2424 = vmatprep.subr.bf16.mxu1 %v2800_v0 }
 0x976   :  { %v578_v25 = vpop.f32.mrb[4].mxu1 }
 0x977   :  { %v582_v26 = vadd.f32 %v578_v25, %v509_v24  ;;  %v2222_v27 = vpop.f32.mrb[5].mxu1 }
 0x979   :  { %2526 = vtanh.f32 %v582_v26  ;;  %v2033_v29 = vmul.f32 -1.442695, %v582_v26 }
 0x97b   :  { %2528 = vpow2.f32 %v2033_v29 }
 0x983   :  { %v2527_v28 = vpop.eup %2526 }
 0x984   :  { %592 = vrot.lane.b32.xlu1 %v2527_v28, %s2803_s19 }
 0x985   :  { %v2529_v30 = vpop.eup %2528 }
 0x986   :  { %v586_v31 = vadd.f32 1.0, %v2529_v30 }
 0x988   :  { %2530 = vrcp.f32 %v586_v31 }
 0x992   :  { %v2531_v32 = vpop.eup %2530 }
 0x993   :  { %v590_v35 = vmul.f32 %v2531_v32, %v497_v18 }
 0x9f6   :  { %v593_v33 = vpop.permute.xlu1 %592 }
 0x9f7   :  { %v595_v34 = vmul.f32 %v2531_v32, %v593_v33 }
 0x9f9   :  { %597 = vrot.lane.b32.xlu0 %v595_v34, %s2804_s24 }
 0xa6b   :  { %v598_v36 = vpop.permute.xlu0 %597 }
 0xa6c   :  { %v600_v37 = vadd.f32 %v598_v36, %v590_v35  ;;  %v921_v35 = vld [vmem:[#allocation2 + $0xe] sm:$0x3] }
 0xa6e   :  { %2532 = vtanh.f32 %v600_v37 }
 0xa78   :  { %v2533_v38 = vpop.eup %2532 }
 0xa79   :  { %603 = vrot.lane.b32.xlu1 %v2533_v38, %s2803_s19 }
 0xaeb   :  { %v604_v39 = vpop.permute.xlu1 %603 }
 0xaec   :  { %v606_v40 = vmul.f32 %v2531_v32, %v604_v39 }
 0xaee   :  { %608 = vrot.lane.b32.xlu0 %v606_v40, %s2804_s24 }
 0xb60   :  { %v609_v41 = vpop.permute.xlu0 %608 }
 0xb61   :  { %611 = vst.msk [vmem:[#allocation11 + $0x6] sm:$0x3] %vm301_vm3, %v609_v41  ;;  %2232 = vmatmul.mubr.msk.f32.vlgmr.msra.gmra.mrb[4].mxu0 %vm194_vm2, %v609_v41 }
 0xb62   :  { %2420 = vmatpush3.bf16.msra.mxu0 %v2938_v13  ;;  %2253 = vmatprep.mubr.msk.f32.mxu0 %vm2801_vm0, %v2802_v1 }
 0xb63   :  { %2421 = vmatprep.subr.bf16.mxu0 %v2800_v0 }
 0xb66   :  { %2423 = vmatpush3.bf16.msra.mxu0 %v2941_v19 }
 0xb68   :  { %v1030_v15 = vld [vmem:[#allocation11] sm:$0xff] }
 0xc34   :  { %v681_v43 = vpop.f32.mrb[4].mxu0 }
 0xc35   :  { %v685_v44 = vadd.f32 %v681_v43, %v612_v42  ;;  %v2233_v45 = vpop.f32.mrb[5].mxu0 }
 0xc37   :  { %2534 = vtanh.f32 %v685_v44  ;;  %v2035_v47 = vmul.f32 -1.442695, %v685_v44 }
 0xc39   :  { %2536 = vpow2.f32 %v2035_v47 }
 0xc41   :  { %v2535_v46 = vpop.eup %2534 }
 0xc42   :  { %695 = vrot.lane.b32.xlu1 %v2535_v46, %s2803_s19 }
 0xc43   :  { %v2537_v48 = vpop.eup %2536 }
 0xc44   :  { %v689_v49 = vadd.f32 1.0, %v2537_v48 }
 0xc46   :  { %2538 = vrcp.f32 %v689_v49 }
 0xc50   :  { %v2539_v50 = vpop.eup %2538 }
 0xc51   :  { %v693_v53 = vmul.f32 %v2539_v50, %v600_v37 }
 0xcb4   :  { %v696_v51 = vpop.permute.xlu1 %695 }
 0xcb5   :  { %v698_v52 = vmul.f32 %v2539_v50, %v696_v51  ;;  %v1033_v51 = vld [vmem:[#allocation8 + $0x8] sm:$0xff] }
 0xcb7   :  { %700 = vrot.lane.b32.xlu0 %v698_v52, %s2804_s24 }
 0xd29   :  { %v701_v54 = vpop.permute.xlu0 %700 }
 0xd2a   :  { %v703_v55 = vadd.f32 %v701_v54, %v693_v53  ;;  %v1034_v53 = vld [vmem:[#allocation8 + $0x10] sm:$0xff]  ;;  %v1035_v54 = vld [vmem:[#allocation8 + $0x18] sm:$0xff] }
 0xd2c   :  { %2540 = vtanh.f32 %v703_v55 }
 0xd36   :  { %v2541_v56 = vpop.eup %2540 }
 0xd37   :  { %706 = vrot.lane.b32.xlu1 %v2541_v56, %s2803_s19  ;;  %v1128_v56 = vld [vmem:[#allocation9 + $0x20] sm:$0xff] }
 0xda9   :  { %v707_v57 = vpop.permute.xlu1 %706 }
 0xdaa   :  { %v709_v58 = vmul.f32 %v2539_v50, %v707_v57  ;;  %v1032_v50 = vld [vmem:[#allocation8] sm:$0xff]  ;;  %v1129_v57 = vld [vmem:[#allocation9 + $0x28] sm:$0xff] }
 0xdab   :  { %v2430_v52 = vpack.c.bf16 %v1033_v51, %v1032_v50 }
 0xdac   :  { %711 = vrot.lane.b32.xlu0 %v709_v58, %s2804_s24  ;;  %v1130_v58 = vld [vmem:[#allocation9 + $0x30] sm:$0xff] }
 0xdad   :  { %2431 = vmatprep.subr.bf16.mxu0 %v2430_v52 }
 0xe1e   :  { %v712_v59 = vpop.permute.xlu0 %711 }
 0xe1f   :  { %714 = vst.msk [vmem:[#allocation11 + $0x8] sm:$0x3] %vm301_vm3, %v712_v59  ;;  %2243 = vmatmul.mubr.msk.f32.vlgmr.msra.gmra.mrb[6].mxu1 %vm194_vm2, %v712_v59  ;;  %v3052_v59 = vpack.c.bf16 %v1129_v57, %v1128_v56 }
 0xe20   :  { %2426 = vmatpush3.bf16.msra.mxu1 %v2938_v13  ;;  %2264 = vmatprep.mubr.msk.f32.mxu1 %vm2801_vm0, %v2802_v1 }
 0xe21   :  { %2427 = vmatprep.subr.bf16.mxu1 %v2800_v0 }
 0xe24   :  { %2429 = vmatpush3.bf16.msra.mxu1 %v2941_v19 }
 0xe25   :  { %2438 = vmatprep.subr.bf16.mxu1 %v2800_v0 }
 0xef2   :  { %v784_v61 = vpop.f32.mrb[6].mxu1 }
 0xef3   :  { %v788_v62 = vadd.f32 %v784_v61, %v715_v60  ;;  %v2244_v63 = vpop.f32.mrb[7].mxu1  ;;  %v1131_v60 = vld [vmem:[#allocation9 + $0x38] sm:$0xff] }
 0xef4   :  { %v3055_v63 = vpack.c.bf16 %v1131_v60, %v1130_v58 }
 0xef5   :  { %2542 = vtanh.f32 %v788_v62  ;;  %v2037_v3 = vmul.f32 -1.442695, %v788_v62 }
 0xef7   :  { %2544 = vpow2.f32 %v2037_v3  ;;  %v2046_v3 = vld [vmem:[%s3230_s5 + $0x2] sm:$0x3] }
 0xeff   :  { %v2543_v2 = vpop.eup %2542 }
 0xf00   :  { %798 = vrot.lane.b32.xlu1 %v2543_v2, %s2803_s19  ;;  %v2047_v2 = vld [vmem:[%s3231_s6 + $0x2] sm:$0x3] }
 0xf01   :  { %v2545_v13 = vpop.eup %2544 }
 0xf02   :  { %v792_v4 = vadd.f32 1.0, %v2545_v13 }
 0xf04   :  { %2546 = vrcp.f32 %v792_v4 }
 0xf0e   :  { %v2547_v5 = vpop.eup %2546 }
 0xf0f   :  { %v796_v19 = vmul.f32 %v2547_v5, %v703_v55  ;;  %v2434_v55 = vpack.c.bf16 %v1035_v54, %v1034_v53 }
 0xf72   :  { %v799_v6 = vpop.permute.xlu1 %798 }
 0xf73   :  { %v801_v7 = vmul.f32 %v2547_v5, %v799_v6 }
 0xf75   :  { %803 = vrot.lane.b32.xlu0 %v801_v7, %s2804_s24  ;;  %v2043_v7 = vld [vmem:[%s3229_s4 + $0x1] ss:$0 sm:$0xff]  ;;  %s2805_s4 = smov 96  }
 0xfe7   :  { %v804_v8 = vpop.permute.xlu0 %803 }
 0xfe8   :  { %v806_v9 = vadd.f32 %v804_v8, %v796_v19 }
 0xfea   :  { %2548 = vtanh.f32 %v806_v9 }
 0xff4   :  { %v2549_v10 = vpop.eup %2548 }
 0xff5   :  { %809 = vrot.lane.b32.xlu1 %v2549_v10, %s2803_s19 }
0x1067   :  { %v810_v11 = vpop.permute.xlu1 %809 }
0x1068   :  { %v812_v12 = vmul.f32 %v2547_v5, %v810_v11 }
0x106a   :  { %814 = vrot.lane.b32.xlu0 %v812_v12, %s2804_s24 }
0x10dc   :  { %v815_v14 = vpop.permute.xlu0 %814 }
0x10dd   :  { %817 = vst.msk [vmem:[#allocation11 + $0xa] sm:$0x3] %vm301_vm3, %v815_v14  ;;  %2254 = vmatmul.mubr.msk.f32.vlgmr.msra.gmra.mrb[6].mxu0 %vm194_vm2, %v815_v14 }
0x10de   :  { %2275 = vmatprep.mubr.msk.f32.mxu0 %vm194_vm2, %v1030_v15  ;;  %2433 = vmatpush3.bf16.msra.mxu0 %v2430_v52 }
0x10df   :  { %2435 = vmatprep.subr.bf16.mxu0 %v2434_v55 }
0x10e2   :  { %2437 = vmatpush3.bf16.msra.mxu0 %v2434_v55 }
0x10e3   :  { %2444 = vmatprep.subr.bf16.mxu0 %v2800_v0 }
0x11b0   :  { %v887_v17 = vpop.f32.mrb[6].mxu0 }
0x11b1   :  { %v891_v18 = vadd.f32 %v887_v17, %v818_v16  ;;  %v2255_v20 = vpop.f32.mrb[7].mxu0 }
0x11b3   :  { %2550 = vtanh.f32 %v891_v18  ;;  %v2039_v22 = vmul.f32 -1.442695, %v891_v18 }
0x11b5   :  { %2552 = vpow2.f32 %v2039_v22 }
0x11bd   :  { %v2551_v21 = vpop.eup %2550 }
0x11be   :  { %901 = vrot.lane.b32.xlu1 %v2551_v21, %s2803_s19 }
0x11bf   :  { %v2553_v23 = vpop.eup %2552 }
0x11c0   :  { %v895_v24 = vadd.f32 1.0, %v2553_v23 }
0x11c2   :  { %2554 = vrcp.f32 %v895_v24 }
0x11cc   :  { %v2555_v25 = vpop.eup %2554 }
0x11cd   :  { %v899_v28 = vmul.f32 %v2555_v25, %v806_v9 }
0x1230   :  { %v902_v26 = vpop.permute.xlu1 %901 }
0x1231   :  { %v904_v27 = vmul.f32 %v2555_v25, %v902_v26 }
0x1233   :  { %906 = vrot.lane.b32.xlu0 %v904_v27, %s2804_s24 }
0x12a5   :  { %v907_v29 = vpop.permute.xlu0 %906 }
0x12a6   :  { %v909_v30 = vadd.f32 %v907_v29, %v899_v28 }
0x12a8   :  { %2556 = vtanh.f32 %v909_v30 }
0x12b2   :  { %v2557_v31 = vpop.eup %2556 }
0x12b3   :  { %912 = vrot.lane.b32.xlu1 %v2557_v31, %s2803_s19 }
0x1325   :  { %v913_v32 = vpop.permute.xlu1 %912 }
0x1326   :  { %v915_v33 = vmul.f32 %v2555_v25, %v913_v32 }
0x1328   :  { %917 = vrot.lane.b32.xlu0 %v915_v33, %s2804_s24 }
0x139a   :  { %v918_v34 = vpop.permute.xlu0 %917 }
0x139b   :  { %920 = vst.msk [vmem:[#allocation11 + $0xc] sm:$0x3] %vm301_vm3, %v918_v34  ;;  %2265 = vmatmul.mubr.msk.f32.vlgmr.msra.gmra.mrb[8].mxu1 %vm194_vm2, %v918_v34 }
0x139c   :  { %2286 = vmatprep.mubr.msk.f32.mxu1 %vm2801_vm0, %v2802_v1  ;;  %2440 = vmatpush3.bf16.msra.mxu1 %v3052_v59 }
0x139d   :  { %2441 = vmatprep.subr.bf16.mxu1 %v2800_v0 }
0x13a0   :  { %2443 = vmatpush3.bf16.msra.mxu1 %v3055_v63 }
0x13a1   :  { %2450 = vmatprep.subr.bf16.mxu1 %v2800_v0 }
0x13a3   :  { %2287 = vmatmul.mubr.msk.f32.vlgmr.msra.gmra.mrb[10].mxu1 %vm194_vm2, %v2046_v3 }
0x13a4   :  { %2452 = vmatpush3.bf16.msra.mxu1 %v3052_v59  ;;  %2308 = vmatprep.mubr.msk.f32.mxu1 %vm2801_vm0, %v2802_v1 }
0x13a5   :  { %2453 = vmatprep.subr.bf16.mxu1 %v2800_v0 }
0x13a8   :  { %2455 = vmatpush3.bf16.msra.mxu1 %v3055_v63 }
0x13a9   :  { %2462 = vmatprep.subr.bf16.mxu1 %v2800_v0 }
0x146e   :  { %v990_v36 = vpop.f32.mrb[8].mxu1 }
0x146f   :  { %v994_v37 = vadd.f32 %v990_v36, %v921_v35  ;;  %v2266_v38 = vpop.f32.mrb[9].mxu1 }
0x1471   :  { %2558 = vtanh.f32 %v994_v37  ;;  %v2041_v40 = vmul.f32 -1.442695, %v994_v37 }
0x1473   :  { %2560 = vpow2.f32 %v2041_v40 }
0x1476   :  { %v1206_v5 = vpop.f32.mrb[10].mxu1 }
0x1477   :  { %v2288_v6 = vpop.f32.mrb[11].mxu1 }
0x147b   :  { %v2559_v39 = vpop.eup %2558 }
0x147c   :  { %1004 = vrot.lane.b32.xlu1 %v2559_v39, %s2803_s19 }
0x147d   :  { %v2561_v41 = vpop.eup %2560 }
0x147e   :  { %v998_v42 = vadd.f32 1.0, %v2561_v41 }
0x1480   :  { %2562 = vrcp.f32 %v998_v42 }
0x148a   :  { %v2563_v43 = vpop.eup %2562 }
0x148b   :  { %v1002_v46 = vmul.f32 %v2563_v43, %v909_v30 }
0x14ee   :  { %v1005_v44 = vpop.permute.xlu1 %1004 }
0x14ef   :  { %v1007_v45 = vmul.f32 %v2563_v43, %v1005_v44 }
0x14f1   :  { %1009 = vrot.lane.b32.xlu0 %v1007_v45, %s2804_s24 }
0x1563   :  { %v1010_v47 = vpop.permute.xlu0 %1009 }
0x1564   :  { %v3047_v48 = vadd.f32 %v1010_v47, %v1002_v46 }
0x1566   :  { %2564 = vtanh.f32 %v3047_v48 }
0x1570   :  { %v2565_v49 = vpop.eup %2564 }
0x1571   :  { %1015 = vrot.lane.b32.xlu1 %v2565_v49, %s2803_s19 }
0x15e3   :  { %v1016_v61 = vpop.permute.xlu1 %1015 }
0x15e4   :  { %v1018_v62 = vmul.f32 %v2563_v43, %v1016_v61 }
0x15e6   :  { %1020 = vrot.lane.b32.xlu0 %v1018_v62, %s2804_s24 }
0x15ea   :  { %1219 = vrot.lane.b32.xlu0 %v2047_v2, %s2804_s24 }
0x1658   :  { %v1021_v13 = vpop.permute.xlu0 %1020 }
0x1659   :  { %1023 = vst.msk [vmem:[#allocation11 + $0xe] sm:$0x3] %vm301_vm3, %v1021_v13  ;;  %1024 = vst.msk [vmem:[#allocation12] sm:$0x3] %vm301_vm3, %v1021_v13 }
0x165c   :  { %v1220_v22 = vpop.permute.xlu0 %1219 }
0x1660   :  { %v1031_v4 = vld [vmem:[#allocation11 + $0x8] sm:$0xff] }
0x1661   :  { %2276 = vmatmul.mubr.msk.f32.vlgmr.msra.gmra.mrb[8].mxu0 %vm194_vm2, %v1031_v4 }
0x1662   :  { %2446 = vmatpush3.bf16.msra.mxu0 %v3052_v59  ;;  %2297 = vmatprep.mubr.msk.f32.mxu0 %vm2801_vm0, %v2802_v1 }
0x1663   :  { %2447 = vmatprep.subr.bf16.mxu0 %v2800_v0 }
0x1666   :  { %2449 = vmatpush3.bf16.msra.mxu0 %v3055_v63 }
0x1667   :  { %2456 = vmatprep.subr.bf16.mxu0 %v2800_v0 }
0x1734   :  { %v2277_v19 = vpop.f32.mrb[8].mxu0 }
0x1735   :  { %v1122_v8 = vadd.f32 %v2277_v19, %v2043_v7  ;;  %v1116_v9 = vpop.f32.mrb[9].mxu0 }
0x1736   :  { %v1117_v10 = vadd.f32 %v2043_v7, %v1116_v9 }
0x1737   :  { %1126 = vst [vmem:[#allocation2 + $0x8] sm:$0xff] %v1122_v8 }
0x1738   :  { %1125 = vst [vmem:[#allocation2] sm:$0xff] %v1117_v10 }
0x173f   :  { %v1136_v11 = vld [vmem:[#allocation2] sm:$0x3]  ;;  %v1244_v30 = vld [vmem:[#allocation2 + $0x2] sm:$0x3]  ;;  %v1347_v49 = vld [vmem:[#allocation2 + $0x4] sm:$0x3] }
0x1740   :  { %v1210_v12 = vadd.f32 %v1206_v5, %v1136_v11  ;;  %v1450_v6 = vld [vmem:[#allocation2 + $0x6] sm:$0x3] }
0x1742   :  { %2566 = vtanh.f32 %v1210_v12  ;;  %v2049_v15 = vmul.f32 -1.442695, %v1210_v12 }
0x1744   :  { %2568 = vpow2.f32 %v2049_v15 }
0x174c   :  { %v2567_v14 = vpop.eup %2566 }
0x174d   :  { %1224 = vrot.lane.b32.xlu1 %v2567_v14, %s2803_s19 }
0x174e   :  { %v2569_v16 = vpop.eup %2568 }
0x174f   :  { %v1214_v17 = vadd.f32 1.0, %v2569_v16 }
0x1751   :  { %2570 = vrcp.f32 %v1214_v17 }
0x175b   :  { %v2571_v18 = vpop.eup %2570 }
0x175c   :  { %v1222_v23 = vmul.f32 %v2571_v18, %v1220_v22 }
0x17bf   :  { %v1225_v20 = vpop.permute.xlu1 %1224 }
0x17c0   :  { %v1227_v21 = vmul.f32 %v2571_v18, %v1225_v20 }
0x17c2   :  { %1229 = vrot.lane.b32.xlu1 %v1227_v21, %s2804_s24 }
0x1834   :  { %v1230_v24 = vpop.permute.xlu1 %1229 }
0x1835   :  { %v1232_v25 = vadd.f32 %v1230_v24, %v1222_v23 }
0x1837   :  { %2572 = vtanh.f32 %v1232_v25 }
0x1841   :  { %v2573_v26 = vpop.eup %2572 }
0x1842   :  { %1235 = vrot.lane.b32.xlu0 %v2573_v26, %s2803_s19 }
0x18b4   :  { %v1236_v27 = vpop.permute.xlu0 %1235 }
0x18b5   :  { %v1238_v28 = vmul.f32 %v2571_v18, %v1236_v27 }
0x18b7   :  { %1240 = vrot.lane.b32.xlu1 %v1238_v28, %s2804_s24 }
0x1929   :  { %v1241_v29 = vpop.permute.xlu1 %1240 }
0x192a   :  { %1243 = vst.msk [vmem:[#allocation11] sm:$0x3] %vm301_vm3, %v1241_v29  ;;  %2298 = vmatmul.mubr.msk.f32.vlgmr.msra.gmra.mrb[10].mxu0 %vm194_vm2, %v1241_v29 }
0x192b   :  { %2458 = vmatpush3.bf16.msra.mxu0 %v3052_v59  ;;  %2319 = vmatprep.mubr.msk.f32.mxu0 %vm2801_vm0, %v2802_v1 }
0x192c   :  { %2459 = vmatprep.subr.bf16.mxu0 %v2800_v0 }
0x192f   :  { %2461 = vmatpush3.bf16.msra.mxu0 %v3055_v63 }
0x1930   :  { %2468 = vmatprep.subr.bf16.mxu0 %v2800_v0 }
0x19fd   :  { %v1313_v31 = vpop.f32.mrb[10].mxu0 }
0x19fe   :  { %v1317_v32 = vadd.f32 %v1313_v31, %v1244_v30  ;;  %v2299_v33 = vpop.f32.mrb[11].mxu0 }
0x1a00   :  { %2574 = vtanh.f32 %v1317_v32  ;;  %v2051_v35 = vmul.f32 -1.442695, %v1317_v32 }
0x1a02   :  { %2576 = vpow2.f32 %v2051_v35 }
0x1a0a   :  { %v2575_v34 = vpop.eup %2574 }
0x1a0b   :  { %1327 = vrot.lane.b32.xlu0 %v2575_v34, %s2803_s19 }
0x1a0c   :  { %v2577_v36 = vpop.eup %2576 }
0x1a0d   :  { %v1321_v37 = vadd.f32 1.0, %v2577_v36 }
0x1a0f   :  { %2578 = vrcp.f32 %v1321_v37 }
0x1a19   :  { %v2579_v38 = vpop.eup %2578 }
0x1a1a   :  { %v1325_v41 = vmul.f32 %v2579_v38, %v1232_v25  ;;  %v1553_v25 = vld [vmem:[#allocation2 + $0x8] sm:$0x3] }
0x1a7d   :  { %v1328_v39 = vpop.permute.xlu0 %1327 }
0x1a7e   :  { %v1330_v40 = vmul.f32 %v2579_v38, %v1328_v39 }
0x1a80   :  { %1332 = vrot.lane.b32.xlu1 %v1330_v40, %s2804_s24 }
0x1af2   :  { %v1333_v42 = vpop.permute.xlu1 %1332 }
0x1af3   :  { %v1335_v43 = vadd.f32 %v1333_v42, %v1325_v41 }
0x1af5   :  { %2580 = vtanh.f32 %v1335_v43 }
0x1aff   :  { %v2581_v44 = vpop.eup %2580 }
0x1b00   :  { %1338 = vrot.lane.b32.xlu0 %v2581_v44, %s2803_s19 }
0x1b72   :  { %v1339_v45 = vpop.permute.xlu0 %1338 }
0x1b73   :  { %v1341_v46 = vmul.f32 %v2579_v38, %v1339_v45 }
0x1b75   :  { %1343 = vrot.lane.b32.xlu1 %v1341_v46, %s2804_s24 }
0x1be7   :  { %v1344_v47 = vpop.permute.xlu1 %1343 }
0x1be8   :  { %1346 = vst.msk [vmem:[#allocation11 + $0x2] sm:$0x3] %vm301_vm3, %v1344_v47  ;;  %2309 = vmatmul.mubr.msk.f32.vlgmr.msra.gmra.mrb[12].mxu1 %vm194_vm2, %v1344_v47 }
0x1be9   :  { %2464 = vmatpush3.bf16.msra.mxu1 %v3052_v59  ;;  %2330 = vmatprep.mubr.msk.f32.mxu1 %vm2801_vm0, %v2802_v1 }
0x1bea   :  { %2465 = vmatprep.subr.bf16.mxu1 %v2800_v0 }
0x1bed   :  { %2467 = vmatpush3.bf16.msra.mxu1 %v3055_v63 }
0x1bee   :  { %2474 = vmatprep.subr.bf16.mxu1 %v2800_v0 }
0x1cbb   :  { %v1416_v50 = vpop.f32.mrb[12].mxu1 }
0x1cbc   :  { %v1420_v51 = vadd.f32 %v1416_v50, %v1347_v49  ;;  %v2310_v52 = vpop.f32.mrb[13].mxu1 }
0x1cbe   :  { %2582 = vtanh.f32 %v1420_v51  ;;  %v2053_v54 = vmul.f32 -1.442695, %v1420_v51 }
0x1cc0   :  { %2584 = vpow2.f32 %v2053_v54 }
0x1cc8   :  { %v2583_v53 = vpop.eup %2582 }
0x1cc9   :  { %1430 = vrot.lane.b32.xlu0 %v2583_v53, %s2803_s19 }
0x1cca   :  { %v2585_v55 = vpop.eup %2584 }
0x1ccb   :  { %v1424_v56 = vadd.f32 1.0, %v2585_v55 }
0x1ccd   :  { %2586 = vrcp.f32 %v1424_v56 }
0x1cd7   :  { %v2587_v57 = vpop.eup %2586 }
0x1cd8   :  { %v1428_v61 = vmul.f32 %v2587_v57, %v1335_v43  ;;  %v1656_v43 = vld [vmem:[#allocation2 + $0xa] sm:$0x3] }
0x1d3b   :  { %v1431_v58 = vpop.permute.xlu0 %1430 }
0x1d3c   :  { %v1433_v60 = vmul.f32 %v2587_v57, %v1431_v58  ;;  %v1759_v58 = vld [vmem:[#allocation2 + $0xc] sm:$0x3] }
0x1d3e   :  { %1435 = vrot.lane.b32.xlu1 %v1433_v60, %s2804_s24 }
0x1db0   :  { %v1436_v62 = vpop.permute.xlu1 %1435 }
0x1db1   :  { %v1438_v2 = vadd.f32 %v1436_v62, %v1428_v61 }
0x1db3   :  { %2588 = vtanh.f32 %v1438_v2 }
0x1dbd   :  { %v2589_v3 = vpop.eup %2588 }
0x1dbe   :  { %1441 = vrot.lane.b32.xlu0 %v2589_v3, %s2803_s19 }
0x1e30   :  { %v1442_v13 = vpop.permute.xlu0 %1441 }
0x1e31   :  { %v1444_v4 = vmul.f32 %v2587_v57, %v1442_v13 }
0x1e33   :  { %1446 = vrot.lane.b32.xlu1 %v1444_v4, %s2804_s24 }
0x1ea5   :  { %v1447_v5 = vpop.permute.xlu1 %1446 }
0x1ea6   :  { %1449 = vst.msk [vmem:[#allocation11 + $0x4] sm:$0x3] %vm301_vm3, %v1447_v5  ;;  %2320 = vmatmul.mubr.msk.f32.vlgmr.msra.gmra.mrb[12].mxu0 %vm194_vm2, %v1447_v5 }
0x1ea7   :  { %2470 = vmatpush3.bf16.msra.mxu0 %v3052_v59  ;;  %2341 = vmatprep.mubr.msk.f32.mxu0 %vm2801_vm0, %v2802_v1 }
0x1ea8   :  { %2471 = vmatprep.subr.bf16.mxu0 %v2800_v0 }
0x1eab   :  { %2473 = vmatpush3.bf16.msra.mxu0 %v3055_v63 }
0x1eac   :  { %2480 = vmatprep.subr.bf16.mxu0 %v2800_v0 }
0x1f79   :  { %v1519_v7 = vpop.f32.mrb[12].mxu0 }
0x1f7a   :  { %v1523_v19 = vadd.f32 %v1519_v7, %v1450_v6  ;;  %v2321_v8 = vpop.f32.mrb[13].mxu0 }
0x1f7c   :  { %2590 = vtanh.f32 %v1523_v19  ;;  %v2055_v10 = vmul.f32 -1.442695, %v1523_v19 }
0x1f7e   :  { %2592 = vpow2.f32 %v2055_v10 }
0x1f86   :  { %v2591_v9 = vpop.eup %2590 }
0x1f87   :  { %1533 = vrot.lane.b32.xlu0 %v2591_v9, %s2803_s19 }
0x1f88   :  { %v2593_v11 = vpop.eup %2592 }
0x1f89   :  { %v1527_v12 = vadd.f32 1.0, %v2593_v11 }
0x1f8b   :  { %2594 = vrcp.f32 %v1527_v12 }
0x1f95   :  { %v2595_v14 = vpop.eup %2594 }
0x1f96   :  { %v1531_v17 = vmul.f32 %v2595_v14, %v1438_v2 }
0x1ff9   :  { %v1534_v15 = vpop.permute.xlu0 %1533 }
0x1ffa   :  { %v1536_v16 = vmul.f32 %v2595_v14, %v1534_v15  ;;  %v1862_v15 = vld [vmem:[#allocation2 + $0xe] sm:$0x3] }
0x1ffc   :  { %1538 = vrot.lane.b32.xlu1 %v1536_v16, %s2804_s24 }
0x206e   :  { %v1539_v18 = vpop.permute.xlu1 %1538 }
0x206f   :  { %v1541_v20 = vadd.f32 %v1539_v18, %v1531_v17 }
0x2071   :  { %2596 = vtanh.f32 %v1541_v20 }
0x207b   :  { %v2597_v21 = vpop.eup %2596 }
0x207c   :  { %1544 = vrot.lane.b32.xlu0 %v2597_v21, %s2803_s19 }
0x20ee   :  { %v1545_v22 = vpop.permute.xlu0 %1544 }
0x20ef   :  { %v1547_v23 = vmul.f32 %v2595_v14, %v1545_v22 }
0x20f1   :  { %1549 = vrot.lane.b32.xlu1 %v1547_v23, %s2804_s24 }
0x2163   :  { %v1550_v24 = vpop.permute.xlu1 %1549 }
0x2164   :  { %1552 = vst.msk [vmem:[#allocation11 + $0x6] sm:$0x3] %vm301_vm3, %v1550_v24  ;;  %2331 = vmatmul.mubr.msk.f32.vlgmr.msra.gmra.mrb[14].mxu1 %vm194_vm2, %v1550_v24 }
0x2165   :  { %2476 = vmatpush3.bf16.msra.mxu1 %v3052_v59  ;;  %2352 = vmatprep.mubr.msk.f32.mxu1 %vm2801_vm0, %v2802_v1 }
0x2166   :  { %2477 = vmatprep.subr.bf16.mxu1 %v2800_v0 }
0x2169   :  { %2479 = vmatpush3.bf16.msra.mxu1 %v3055_v63 }
0x2237   :  { %v1622_v26 = vpop.f32.mrb[14].mxu1 }
0x2238   :  { %v1626_v27 = vadd.f32 %v1622_v26, %v1553_v25  ;;  %v2332_v28 = vpop.f32.mrb[15].mxu1 }
0x223a   :  { %2598 = vtanh.f32 %v1626_v27  ;;  %v2057_v30 = vmul.f32 -1.442695, %v1626_v27 }
0x223c   :  { %2600 = vpow2.f32 %v2057_v30 }
0x2244   :  { %v2599_v29 = vpop.eup %2598 }
0x2245   :  { %1636 = vrot.lane.b32.xlu0 %v2599_v29, %s2803_s19 }
0x2246   :  { %v2601_v31 = vpop.eup %2600 }
0x2247   :  { %v1630_v32 = vadd.f32 1.0, %v2601_v31 }
0x2249   :  { %2602 = vrcp.f32 %v1630_v32 }
0x2253   :  { %v2603_v33 = vpop.eup %2602 }
0x2254   :  { %v1634_v36 = vmul.f32 %v2603_v33, %v1541_v20 }
0x22b7   :  { %v1637_v34 = vpop.permute.xlu0 %1636 }
0x22b8   :  { %v1639_v35 = vmul.f32 %v2603_v33, %v1637_v34 }
0x22ba   :  { %1641 = vrot.lane.b32.xlu1 %v1639_v35, %s2804_s24 }
0x232c   :  { %v1642_v37 = vpop.permute.xlu1 %1641 }
0x232d   :  { %v1644_v38 = vadd.f32 %v1642_v37, %v1634_v36 }
0x232f   :  { %2604 = vtanh.f32 %v1644_v38 }
0x2339   :  { %v2605_v39 = vpop.eup %2604 }
0x233a   :  { %1647 = vrot.lane.b32.xlu0 %v2605_v39, %s2803_s19 }
0x23ac   :  { %v1648_v40 = vpop.permute.xlu0 %1647 }
0x23ad   :  { %v1650_v41 = vmul.f32 %v2603_v33, %v1648_v40 }
0x23af   :  { %1652 = vrot.lane.b32.xlu1 %v1650_v41, %s2804_s24 }
0x2421   :  { %v1653_v42 = vpop.permute.xlu1 %1652 }
0x2422   :  { %1655 = vst.msk [vmem:[#allocation11 + $0x8] sm:$0x3] %vm301_vm3, %v1653_v42  ;;  %2342 = vmatmul.mubr.msk.f32.vlgmr.msra.gmra.mrb[14].mxu0 %vm194_vm2, %v1653_v42 }
0x2423   :  { %2482 = vmatpush3.bf16.msra.mxu0 %v3052_v59  ;;  %2363 = vmatprep.mubr.msk.f32.mxu0 %vm2801_vm0, %v2802_v1 }
0x2424   :  { %2483 = vmatprep.subr.bf16.mxu0 %v2800_v0 }
0x2427   :  { %2485 = vmatpush3.bf16.msra.mxu0 %v3055_v63 }
0x24f5   :  { %v1725_v44 = vpop.f32.mrb[14].mxu0 }
0x24f6   :  { %v1729_v45 = vadd.f32 %v1725_v44, %v1656_v43  ;;  %v2343_v46 = vpop.f32.mrb[15].mxu0 }
0x24f8   :  { %2606 = vtanh.f32 %v1729_v45  ;;  %v2059_v49 = vmul.f32 -1.442695, %v1729_v45 }
0x24fa   :  { %2608 = vpow2.f32 %v2059_v49 }
0x2502   :  { %v2607_v47 = vpop.eup %2606 }
0x2503   :  { %1739 = vrot.lane.b32.xlu0 %v2607_v47, %s2803_s19 }
0x2504   :  { %v2609_v50 = vpop.eup %2608 }
0x2505   :  { %v1733_v51 = vadd.f32 1.0, %v2609_v50 }
0x2507   :  { %2610 = vrcp.f32 %v1733_v51 }
0x2511   :  { %v2611_v59 = vpop.eup %2610 }
0x2512   :  { %v1737_v0 = vmul.f32 %v2611_v59, %v1644_v38 }
0x2575   :  { %v1740_v52 = vpop.permute.xlu0 %1739 }
0x2576   :  { %v1742_v1 = vmul.f32 %v2611_v59, %v1740_v52 }
0x2578   :  { %1744 = vrot.lane.b32.xlu1 %v1742_v1, %s2804_s24 }
0x25ea   :  { %v1745_v63 = vpop.permute.xlu1 %1744 }
0x25eb   :  { %v1747_v53 = vadd.f32 %v1745_v63, %v1737_v0 }
0x25ed   :  { %2612 = vtanh.f32 %v1747_v53 }
0x25f7   :  { %v2613_v54 = vpop.eup %2612 }
0x25f8   :  { %1750 = vrot.lane.b32.xlu0 %v2613_v54, %s2803_s19 }
0x266a   :  { %v1751_v55 = vpop.permute.xlu0 %1750 }
0x266b   :  { %v1753_v56 = vmul.f32 %v2611_v59, %v1751_v55 }
0x266d   :  { %1755 = vrot.lane.b32.xlu1 %v1753_v56, %s2804_s24 }
0x26df   :  { %v1756_v57 = vpop.permute.xlu1 %1755 }
0x26e0   :  { %1758 = vst.msk [vmem:[#allocation11 + $0xa] sm:$0x3] %vm301_vm3, %v1756_v57  ;;  %2353 = vmatmul.mubr.msk.f32.vlgmr.msra.gmra.mrb[16].mxu1 %vm194_vm2, %v1756_v57 }
0x27b3   :  { %v1828_v60 = vpop.f32.mrb[16].mxu1 }
0x27b4   :  { %v1832_v61 = vadd.f32 %v1828_v60, %v1759_v58  ;;  %v2354_v62 = vpop.f32.mrb[17].mxu1 }
0x27b6   :  { %2614 = vtanh.f32 %v1832_v61  ;;  %v2061_v3 = vmul.f32 -1.442695, %v1832_v61 }
0x27b8   :  { %2616 = vpow2.f32 %v2061_v3 }
0x27c0   :  { %v2615_v2 = vpop.eup %2614 }
0x27c1   :  { %1842 = vrot.lane.b32.xlu0 %v2615_v2, %s2803_s19 }
0x27c2   :  { %v2617_v13 = vpop.eup %2616 }
0x27c3   :  { %v1836_v4 = vadd.f32 1.0, %v2617_v13 }
0x27c5   :  { %2618 = vrcp.f32 %v1836_v4 }
0x27cf   :  { %v2619_v5 = vpop.eup %2618 }
0x27d0   :  { %v1840_v19 = vmul.f32 %v2619_v5, %v1747_v53 }
0x2833   :  { %v1843_v6 = vpop.permute.xlu0 %1842 }
0x2834   :  { %v1845_v7 = vmul.f32 %v2619_v5, %v1843_v6 }
0x2836   :  { %1847 = vrot.lane.b32.xlu1 %v1845_v7, %s2804_s24 }
0x28a8   :  { %v1848_v8 = vpop.permute.xlu1 %1847 }
0x28a9   :  { %v1850_v9 = vadd.f32 %v1848_v8, %v1840_v19 }
0x28ab   :  { %2620 = vtanh.f32 %v1850_v9 }
0x28b5   :  { %v2621_v10 = vpop.eup %2620 }
0x28b6   :  { %1853 = vrot.lane.b32.xlu0 %v2621_v10, %s2803_s19 }
0x2928   :  { %v1854_v11 = vpop.permute.xlu0 %1853 }
0x2929   :  { %v1856_v12 = vmul.f32 %v2619_v5, %v1854_v11 }
0x292b   :  { %1858 = vrot.lane.b32.xlu1 %v1856_v12, %s2804_s24 }
0x299d   :  { %v1859_v14 = vpop.permute.xlu1 %1858 }
0x299e   :  { %1861 = vst.msk [vmem:[#allocation11 + $0xc] sm:$0x3] %vm301_vm3, %v1859_v14  ;;  %2364 = vmatmul.mubr.msk.f32.vlgmr.msra.gmra.mrb[16].mxu0 %vm194_vm2, %v1859_v14 }
0x2a71   :  { %v1931_v16 = vpop.f32.mrb[16].mxu0 }
0x2a72   :  { %v1935_v17 = vadd.f32 %v1931_v16, %v1862_v15  ;;  %v2365_v18 = vpop.f32.mrb[17].mxu0 }
0x2a74   :  { %2622 = vtanh.f32 %v1935_v17  ;;  %v2063_v21 = vmul.f32 -1.442695, %v1935_v17 }
0x2a76   :  { %2624 = vpow2.f32 %v2063_v21 }
0x2a7e   :  { %v2623_v20 = vpop.eup %2622 }
0x2a7f   :  { %1945 = vrot.lane.b32.xlu0 %v2623_v20, %s2803_s19 }
0x2a80   :  { %v2625_v22 = vpop.eup %2624 }
0x2a81   :  { %v1939_v23 = vadd.f32 1.0, %v2625_v22 }
0x2a83   :  { %2626 = vrcp.f32 %v1939_v23 }
0x2a8d   :  { %v2627_v24 = vpop.eup %2626 }
0x2a8e   :  { %v1943_v27 = vmul.f32 %v2627_v24, %v1850_v9 }
0x2af1   :  { %v1946_v25 = vpop.permute.xlu0 %1945 }
0x2af2   :  { %v1948_v26 = vmul.f32 %v2627_v24, %v1946_v25 }
0x2af4   :  { %1950 = vrot.lane.b32.xlu1 %v1948_v26, %s2804_s24 }
0x2b66   :  { %v1951_v28 = vpop.permute.xlu1 %1950 }
0x2b67   :  { %v1953_v29 = vadd.f32 %v1951_v28, %v1943_v27 }
0x2b69   :  { %2628 = vtanh.f32 %v1953_v29 }
0x2b73   :  { %v2629_v30 = vpop.eup %2628 }
0x2b74   :  { %1956 = vrot.lane.b32.xlu0 %v2629_v30, %s2803_s19 }
0x2b78   :  { %1026 = vrot.lane.b32.xlu0 %v3047_v48, %s2805_s4 }
0x2be6   :  { %v1957_v31 = vpop.permute.xlu0 %1956 }
0x2be7   :  { %v1959_v32 = vmul.f32 %v2627_v24, %v1957_v31 }
0x2be9   :  { %1961 = vrot.lane.b32.xlu1 %v1959_v32, %s2804_s24 }
0x2bea   :  { %v1027_v33 = vpop.permute.xlu0 %1026 }
0x2beb   :  { %1029 = vst.msk [vmem:[#allocation14] sm:$0x3] %vm301_vm3, %v1027_v33 }
0x2bed   :  { %1968 = vrot.lane.b32.xlu1 %v1953_v29, %s2805_s4 }
0x2c5b   :  { %v1962_v34 = vpop.permute.xlu1 %1961 }
0x2c5c   :  { %1964 = vst.msk [vmem:[#allocation11 + $0xe] sm:$0x3] %vm301_vm3, %v1962_v34  ;;  %1966 = vst.msk [vmem:[#allocation12 + $0x2] sm:$0x3] %vm301_vm3, %v1962_v34 }
0x2c5d   :  { %2729 = shalt.err (!%p2726_p8)
}
0x2c5e   :  { %s2730_s2 = scalar_lea.hbm %s3233_s8, 64 }
0x2c5f   :  { %p2731_p9 = scmp.ne.s32.totalorder %s3233_s8, %s2730_s2  ;;  %p2734_p10 = scmp.lt.u32.totalorder %s2730_s2, %s3233_s8 }
0x2c61   :  { %p2736_p11 = pnand %p2734_p10, %p2731_p9 }
0x2c63   :  { %2739 = shalt.err (!%p2736_p11)
}
0x2c64   :  { %s2809_s18 = smov 2   ;;  %s2740_s23 = scalar_lea.vmem %s3163_s30, 256 }
0x2c65   :  { %1996 = dma.vmem_to_hbm [thread:$0]  %s1991_s28, 64, %s3233_s8, [#allocation13], %s2804_s24, %s2804_s24, %s2809_s18  }
0x2c66   :  { %p2741_p12 = scmp.ne.s32.totalorder %s3163_s30, %s2740_s23  ;;  %p2745_p13 = scmp.lt.s32.totalorder %s3163_s30, %s3163_s30 }
0x2c67   :  { %p2746_p0 = scmp.lt.s32.totalorder %s2740_s23, %s2740_s23 }
0x2c69   :  { %p2747_p1 = por %p2746_p0, %p2745_p13 }
0x2c6b   :  { %p2748_p2 = pnand %p2747_p1, %p2741_p12 }
0x2c6d   :  { %2751 = shalt.err (!%p2748_p2)
}
0x2c6e   :  { %s2752_s0 = scalar_lea.hbm %s3232_s7, 256 }
0x2c6f   :  { %p2753_p3 = scmp.ne.s32.totalorder %s3232_s7, %s2752_s0  ;;  %p2756_p4 = scmp.lt.u32.totalorder %s2752_s0, %s3232_s7 }
0x2c71   :  { %p2758_p5 = pnand %p2756_p4, %p2753_p3 }
0x2c73   :  { %2761 = shalt.err (!%p2758_p5)
}
0x2c74   :  { %1984 = dma.vmem_to_hbm [thread:$0]  %s3163_s30, 256, %s3232_s7, [#allocation5], %s2796_s21, %s2796_s21, %s2797_s22   ;;  %v1969_v48 = vpop.permute.xlu1 %1968 }
0x2c75   :  { %1972 = vst.msk [vmem:[#allocation14 + $0x2] sm:$0x3] %vm301_vm3, %v1969_v48  ;;  %s2762_s28 = scalar_lea.vmem %s3167_s13, 64  ;;  %p2767_p7 = scmp.lt.s32.totalorder %s3167_s13, %s3167_s13 }
0x2c76   :  { %p2763_p6 = scmp.ne.s32.totalorder %s3167_s13, %s2762_s28  ;;  %p2768_p8 = scmp.lt.s32.totalorder %s2762_s28, %s2762_s28 }
0x2c78   :  { %p2769_p9 = por %p2768_p8, %p2767_p7 }
0x2c7a   :  { %p2770_p10 = pnand %p2769_p9, %p2763_p6 }
0x2c7c   :  { %2773 = shalt.err (!%p2770_p10)
}
0x2c7d   :  { %s2774_s1 = scalar_lea.hbm %s3234_s9, 64 }
0x2c7e   :  { %p2775_p11 = scmp.ne.s32.totalorder %s3234_s9, %s2774_s1  ;;  %p2778_p12 = scmp.lt.u32.totalorder %s2774_s1, %s3234_s9 }
0x2c80   :  { %p2780_p13 = pnand %p2778_p12, %p2775_p11 }
0x2c82   :  { %2783 = shalt.err (!%p2780_p13)
}
0x2c83   :  { %2008 = dma.vmem_to_hbm [thread:$0]  %s3167_s13, 64, %s3234_s9, [#allocation13], %s2804_s24, %s2804_s24, %s2809_s18  }
0x2c84   :  { %2790 = dma.done.wait [#allocation5], 256  }
0x2c85   :  { %2791 = vsyncadd [#allocation5], 4294967040 }
0x2c86   :  { %2792 = dma.done.wait [#allocation13], 128  }
0x2c87   :  { %2793 = vsyncadd [#allocation13], 4294967168 }
0x2c88   :  { %2018 = vsyncpa [#allocation4], 1 }
0x2c89   :  { %2019 = vsyncpa [#allocation7], 1 }
0x2c8a   :  { %2020 = vsyncpa [#allocation10], 1 }
0x2c8b   :  { %2021 = vsyncpa [#allocation5], 1 }
0x2c8c   :  { %2022 = vsyncpa [#allocation13], 1 }

</bundles_post_ra>
